<compile_context>
chip_gen: v6e
topology: v6e:2x2x1
jax: 0.10.0
libtpu: 0.0.40
codegen_flags: <defaults>
</compile_context>

<pallas_src>
import math

import jax
import jax.numpy as jnp
import numpy as np
from jax.experimental import pallas as pl
from jax.experimental.pallas import tpu as pltpu

# --- small, self-consistent shapes -----------------------------------------
B, S, D = 2, 8, 32          # batch, seq_len, embed_dim
HEADS = 4
HEAD_DIM = D // HEADS       # 8
EXPANSION = 4
FF = EXPANSION * D          # 128
VOCAB = 50
NUM_BLOCKS = 2              # stacked (deep-copied, i.e. identical-weight) DecoderBlocks
LN_EPS = 1e-5
NEG_INF = -1e20

# fused/pre-scaled kernel parameters (built host-side in init_params)
KERNEL_PARAM_NAMES = ["w_enc",                       # (D, 4D): [wq1*inv | wk1 | wv1 | wk2]
                      "wo1", "bo1", "g0", "b0",
                      "wq2", "wv2", "wo2", "bo2", "g1", "b1",
                      "wf1", "bf1", "wf2", "bf2", "g2", "b2"]


# --- math shared by kernel and reference ------------------------------------
def _layernorm(x, g, b):
    mu = jnp.mean(x, axis=-1, keepdims=True)
    var = jnp.mean((x - mu) ** 2, axis=-1, keepdims=True)
    return (x - mu) * jax.lax.rsqrt(var + LN_EPS) * g + b


# --- kernel-side attention helpers -------------------------------------------
def _split_heads(x):
    # (S, D) -> (HEADS, S, HEAD_DIM) via static lane slices + stack (robust Mosaic path,
    # avoids an in-kernel lane-splitting reshape).
    return jnp.stack([x[:, h * HEAD_DIM:(h + 1) * HEAD_DIM] for h in range(HEADS)], axis=0)


def _merge_heads(x):
    # (HEADS, S, HEAD_DIM) -> (S, D), heads back into contiguous lane blocks.
    return jnp.concatenate([x[h] for h in range(HEADS)], axis=-1)


def _attention(q, k, v, bias):
    """Head-batched attention for one batch element.

    q/k/v: (S, D) with per-head projections already applied (block-diagonal fused
    weights; 1/sqrt(head_dim) pre-folded into the Q weights host-side).
    bias: additive (S, S) mask (0 / NEG_INF) or None.  Since exp(-1e20) == 0 in f32,
    adding the bias to the pre-scaled scores matches the reference's
    masked_fill-then-scale semantics exactly after softmax.
    """
    qh, kh, vh = _split_heads(q), _split_heads(k), _split_heads(v)
    s = jnp.einsum("hqd,hkd->hqk", qh, kh,
                   preferred_element_type=jnp.float32)            # (H, S, S)
    if bias is not None:
        s = s + bias[None]
    m = jnp.max(s, axis=-1, keepdims=True)
    e = jnp.exp(s - m)
    denom = jnp.sum(e, axis=-1, keepdims=True)
    p = e * pl.reciprocal(denom, approx=True)                     # EUP reciprocal
    ctx = jnp.einsum("hqk,hkd->hqd", p, vh,
                     preferred_element_type=jnp.float32)          # (H, S, hd)
    return _merge_heads(ctx)                                      # (S, D)


# --- single fused Pallas kernel (one batch element per grid step) -------------
def _decoder_kernel(ids_ref, embed_ref, pe_ref, enc_ref, bias_ref, *rest):
    param_refs = rest[:len(KERNEL_PARAM_NAMES)]
    out_ref = rest[len(KERNEL_PARAM_NAMES)]
    r = dict(zip(KERNEL_PARAM_NAMES, param_refs))
    f32 = jnp.float32

    # --- nn.Embedding gather as one-hot @ table (single MXU dot) + PE --------
    ids = ids_ref[...]                                             # (S, 1) int32
    vocab_iota = jax.lax.broadcasted_iota(jnp.int32, (S, VOCAB), 1)
    onehot = (vocab_iota == ids).astype(f32)                       # (S, VOCAB)
    emb = jnp.dot(onehot, embed_ref[...], preferred_element_type=f32)  # (S, D)
    h = emb * f32(math.sqrt(D)) + pe_ref[...]                      # dropout = identity

    enc = enc_ref[...]                                             # (S, D)
    bias = bias_ref[...]                                           # (S, S) additive mask

    # --- encoder-only work: identical across the weight-tied blocks, do once -
    # single lane-dense (8,32)x(32,128) dot yields q1|k1|v1|k2 (q1 pre-scaled)
    encp = jnp.dot(enc, r["w_enc"][...], preferred_element_type=f32)   # (S, 4D)
    q1 = encp[:, 0 * D:1 * D]
    k1 = encp[:, 1 * D:2 * D]
    v1 = encp[:, 2 * D:3 * D]
    k2 = encp[:, 3 * D:4 * D]

    ctx1 = _attention(q1, k1, v1, bias)
    attn1 = jnp.dot(ctx1, r["wo1"][...], preferred_element_type=f32) + r["bo1"][...]
    value = _layernorm(attn1 + enc, r["g0"][...], r["b0"][...])
    v2 = jnp.dot(value, r["wv2"][...], preferred_element_type=f32)

    # --- per-block loop: only the Q path depends on the evolving decoder state
    for _ in range(NUM_BLOCKS):
        q2 = jnp.dot(h, r["wq2"][...], preferred_element_type=f32)     # scale pre-folded
        ctx2 = _attention(q2, k2, v2, None)
        attn2 = jnp.dot(ctx2, r["wo2"][...], preferred_element_type=f32) + r["bo2"][...]
        n1 = _layernorm(attn2 + value, r["g1"][...], r["b1"][...])
        ffh = jnp.maximum(
            jnp.dot(n1, r["wf1"][...], preferred_element_type=f32) + r["bf1"][...], 0.0)
        ff = jnp.dot(ffh, r["wf2"][...], preferred_element_type=f32) + r["bf2"][...]
        h = _layernorm(ff + n1, r["g2"][...], r["b2"][...])

    out_ref[...] = h.astype(out_ref.dtype)


# --- wrapper -------------------------------------------------------------------
def _rep_spec(shape):
    """Full-array block, same for every grid step (replicated weights)."""
    zeros = (0,) * len(shape)
    return pl.BlockSpec(tuple(shape), lambda b, _z=zeros: _z)


def decoder_forward(x_ids, enc_out, mask, params):
    kb = params["kernel_block"]
    ids_col = x_ids.reshape(B * S, 1).astype(jnp.int32)              # (B*S, 1)
    enc_f32 = enc_out.astype(jnp.float32)                            # (B, S, D)
    # additive mask bias: 0 where attended, NEG_INF where masked (precomputed host-side)
    bias = jnp.where(mask == 0.0, jnp.float32(NEG_INF), jnp.float32(0.0))

    weight_args = [kb[n] for n in KERNEL_PARAM_NAMES]
    in_specs = ([pl.BlockSpec((S, 1), lambda b: (b, 0)),             # token ids, per batch
                 _rep_spec(params["embed"].shape),                   # embedding table
                 _rep_spec((S, D)),                                  # positional encoding
                 pl.BlockSpec((None, S, D), lambda b: (b, 0, 0)),    # encoder output, per batch
                 _rep_spec((S, S))]                                  # additive mask
                + [_rep_spec(w.shape) for w in weight_args])

    out = pl.pallas_call(
        _decoder_kernel,
        out_shape=jax.ShapeDtypeStruct((B, S, D), jnp.float32),
        grid=(B,),
        in_specs=in_specs,
        out_specs=pl.BlockSpec((None, S, D), lambda b: (b, 0, 0)),
        compiler_params=pltpu.CompilerParams(
            # batch axis is embarrassingly parallel -> shards across the two TCs on v7x;
            # on v5e/v6e it is just a 2-step serial loop (~0.35 us/step overhead).
            dimension_semantics=("parallel",),
        ),
    )(ids_col, params["embed"], params["pe"], enc_f32, bias, *weight_args)
    return out


# --- pure-JAX reference (faithful per-head / masked_fill formulation) -----------
def _mha_ref(xk, xq, xv, wq, wk, wv, wo, bo, mask):
    inv = 1.0 / math.sqrt(HEAD_DIM)
    heads = []
    for h in range(HEADS):
        sl = slice(h * HEAD_DIM, (h + 1) * HEAD_DIM)
        qh = jnp.dot(xq[:, sl], wq[h])
        kh = jnp.dot(xk[:, sl], wk[h])
        vh = jnp.dot(xv[:, sl], wv[h])
        s = jnp.dot(qh, kh.T)
        if mask is not None:
            s = jnp.where(mask == 0.0, jnp.float32(NEG_INF), s)     # masked_fill
        s = s * inv
        m = jnp.max(s, axis=-1, keepdims=True)
        e = jnp.exp(s - m)
        p = e / jnp.sum(e, axis=-1, keepdims=True)
        heads.append(jnp.dot(p, vh))
    return jnp.dot(jnp.concatenate(heads, axis=-1), wo) + bo


def _decoder_block_ref(enc, dec, mask, p):
    attn1 = _mha_ref(enc, enc, enc, p["wq1"], p["wk1"], p["wv1"], p["wo1"], p["bo1"], mask)
    value = _layernorm(attn1 + enc, p["g0"], p["b0"])
    attn2 = _mha_ref(enc, dec, value, p["wq2"], p["wk2"], p["wv2"], p["wo2"], p["bo2"], None)
    n1 = _layernorm(attn2 + value, p["g1"], p["b1"])
    ff = jnp.maximum(jnp.dot(n1, p["wf1"]) + p["bf1"], 0.0)
    ff = jnp.dot(ff, p["wf2"]) + p["bf2"]
    return _layernorm(ff + n1, p["g2"], p["b2"])


def decoder_forward_ref(x_ids, enc_out, mask, params):
    emb = params["embed"][x_ids]
    h = emb * math.sqrt(D) + params["pe"][None]
    for _ in range(NUM_BLOCKS):
        h = jnp.stack([_decoder_block_ref(enc_out[b], h[b], mask, params["ref_block"])
                       for b in range(B)])
    return h


# --- deterministic parameter construction ---------------------------------------
def make_positional_encoding(seq_len, d):
    pe = np.zeros((seq_len, d), np.float32)
    for pos in range(seq_len):
        for i in range(0, d, 2):
            pe[pos, i] = math.sin(pos / (10000 ** ((2 * i) / d)))
            pe[pos, i + 1] = math.cos(pos / (10000 ** ((2 * (i + 1)) / d)))
    return jnp.asarray(pe)


def _block_diag(w_heads):
    """(HEADS, HEAD_DIM, HEAD_DIM) per-head projections -> (D, D) block-diagonal."""
    out = jnp.zeros((D, D), jnp.float32)
    for h in range(HEADS):
        sl = slice(h * HEAD_DIM, (h + 1) * HEAD_DIM)
        out = out.at[sl, sl].set(w_heads[h])
    return out


def init_params(key):
    ks = iter(jax.random.split(key, 24))

    def w(shape, scale=0.05):
        return jax.random.normal(next(ks), shape, jnp.float32) * scale

    ones = jnp.ones((1, D), jnp.float32)
    zeros = jnp.zeros((1, D), jnp.float32)
    ref_block = {
        # self-attention (masked) over encoder output
        "wq1": w((HEADS, HEAD_DIM, HEAD_DIM)), "wk1": w((HEADS, HEAD_DIM, HEAD_DIM)),
        "wv1": w((HEADS, HEAD_DIM, HEAD_DIM)), "wo1": w((D, D)), "bo1": w((1, D)),
        "g0": ones, "b0": zeros,
        # cross-attention inside TransformerBlock
        "wq2": w((HEADS, HEAD_DIM, HEAD_DIM)), "wk2": w((HEADS, HEAD_DIM, HEAD_DIM)),
        "wv2": w((HEADS, HEAD_DIM, HEAD_DIM)), "wo2": w((D, D)), "bo2": w((1, D)),
        "g1": ones, "b1": zeros,
        # feed-forward
        "wf1": w((D, FF)), "bf1": w((1, FF)), "wf2": w((FF, D)), "bf2": w((1, D)),
        "g2": ones, "b2": zeros,
    }

    # kernel-side fused weights: block-diagonal per-head projections, all four
    # encoder-side projections fused into one lane-dense (D, 4D) slab, and the
    # 1/sqrt(head_dim) softmax scale folded into the Q weights.
    inv = jnp.float32(1.0 / math.sqrt(HEAD_DIM))
    kernel_block = {
        "w_enc": jnp.concatenate([_block_diag(ref_block["wq1"]) * inv,
                                  _block_diag(ref_block["wk1"]),
                                  _block_diag(ref_block["wv1"]),
                                  _block_diag(ref_block["wk2"])], axis=1),   # (D, 4D)
        "wq2": _block_diag(ref_block["wq2"]) * inv,
        "wv2": _block_diag(ref_block["wv2"]),
        "wo1": ref_block["wo1"], "bo1": ref_block["bo1"],
        "g0": ref_block["g0"], "b0": ref_block["b0"],
        "wo2": ref_block["wo2"], "bo2": ref_block["bo2"],
        "g1": ref_block["g1"], "b1": ref_block["b1"],
        "wf1": ref_block["wf1"], "bf1": ref_block["bf1"],
        "wf2": ref_block["wf2"], "bf2": ref_block["bf2"],
        "g2": ref_block["g2"], "b2": ref_block["b2"],
    }
    return {
        "embed": w((VOCAB, D), scale=0.5),
        "pe": make_positional_encoding(S, D),
        "ref_block": ref_block,
        "kernel_block": kernel_block,
    }


if __name__ == "__main__":
    key = jax.random.PRNGKey(0)
    k_param, k_ids, k_enc = jax.random.split(key, 3)

    params = init_params(k_param)
    x_ids = jax.random.randint(k_ids, (B, S), 0, VOCAB)               # target token ids
    enc_out = jax.random.normal(k_enc, (B, S, D), jnp.float32)        # encoder output
    mask = jnp.tril(jnp.ones((S, S), jnp.float32))                    # causal target mask

    out = jax.block_until_ready(decoder_forward(x_ids, enc_out, mask, params))
    ref = decoder_forward_ref(x_ids, enc_out, mask, params)

    assert out.shape == (B, S, D) and out.dtype == jnp.float32
    assert jnp.allclose(out, ref, rtol=1e-3, atol=1e-3), float(jnp.max(jnp.abs(out - ref)))
    print("KERNEL_OK")
</pallas_src>

<mosaic_0001>
module attributes {stable_mosaic.version = 11 : i64} {
  func.func @_decoder_kernel(%arg0: i32, %arg1: memref<8x1xi32, #tpu.memory_space<vmem>>, %arg2: memref<50x32xf32, #tpu.memory_space<vmem>>, %arg3: memref<8x32xf32, #tpu.memory_space<vmem>>, %arg4: memref<1x8x32xf32, #tpu.memory_space<vmem>>, %arg5: memref<8x8xf32, #tpu.memory_space<vmem>>, %arg6: memref<32x128xf32, #tpu.memory_space<vmem>>, %arg7: memref<32x32xf32, #tpu.memory_space<vmem>>, %arg8: memref<1x32xf32, #tpu.memory_space<vmem>>, %arg9: memref<1x32xf32, #tpu.memory_space<vmem>>, %arg10: memref<1x32xf32, #tpu.memory_space<vmem>>, %arg11: memref<32x32xf32, #tpu.memory_space<vmem>>, %arg12: memref<32x32xf32, #tpu.memory_space<vmem>>, %arg13: memref<32x32xf32, #tpu.memory_space<vmem>>, %arg14: memref<1x32xf32, #tpu.memory_space<vmem>>, %arg15: memref<1x32xf32, #tpu.memory_space<vmem>>, %arg16: memref<1x32xf32, #tpu.memory_space<vmem>>, %arg17: memref<32x128xf32, #tpu.memory_space<vmem>>, %arg18: memref<1x128xf32, #tpu.memory_space<vmem>>, %arg19: memref<128x32xf32, #tpu.memory_space<vmem>>, %arg20: memref<1x32xf32, #tpu.memory_space<vmem>>, %arg21: memref<1x32xf32, #tpu.memory_space<vmem>>, %arg22: memref<1x32xf32, #tpu.memory_space<vmem>>, %arg23: memref<1x8x32xf32, #tpu.memory_space<vmem>>) attributes {dimension_semantics = [#tpu.dimension_semantics<parallel>], iteration_bounds = array<i64: 2>, scalar_prefetch = 0 : i64, scratch_operands = 0 : i64, tpu.core_type = #tpu.core_type<tc>, window_params = [{transform_indices = @transform_0, window_bounds = array<i64: 8, 1>}, {pipeline_mode = #tpu.pipeline_mode<synchronous>, transform_indices = @transform_1, window_bounds = array<i64: 50, 32>}, {pipeline_mode = #tpu.pipeline_mode<synchronous>, transform_indices = @transform_2, window_bounds = array<i64: 8, 32>}, {transform_indices = @transform_3, window_bounds = array<i64: 1, 8, 32>}, {pipeline_mode = #tpu.pipeline_mode<synchronous>, transform_indices = @transform_4, window_bounds = array<i64: 8, 8>}, {pipeline_mode = #tpu.pipeline_mode<synchronous>, transform_indices = @transform_5, window_bounds = array<i64: 32, 128>}, {pipeline_mode = #tpu.pipeline_mode<synchronous>, transform_indices = @transform_6, window_bounds = array<i64: 32, 32>}, {pipeline_mode = #tpu.pipeline_mode<synchronous>, transform_indices = @transform_7, window_bounds = array<i64: 1, 32>}, {pipeline_mode = #tpu.pipeline_mode<synchronous>, transform_indices = @transform_8, window_bounds = array<i64: 1, 32>}, {pipeline_mode = #tpu.pipeline_mode<synchronous>, transform_indices = @transform_9, window_bounds = array<i64: 1, 32>}, {pipeline_mode = #tpu.pipeline_mode<synchronous>, transform_indices = @transform_10, window_bounds = array<i64: 32, 32>}, {pipeline_mode = #tpu.pipeline_mode<synchronous>, transform_indices = @transform_11, window_bounds = array<i64: 32, 32>}, {pipeline_mode = #tpu.pipeline_mode<synchronous>, transform_indices = @transform_12, window_bounds = array<i64: 32, 32>}, {pipeline_mode = #tpu.pipeline_mode<synchronous>, transform_indices = @transform_13, window_bounds = array<i64: 1, 32>}, {pipeline_mode = #tpu.pipeline_mode<synchronous>, transform_indices = @transform_14, window_bounds = array<i64: 1, 32>}, {pipeline_mode = #tpu.pipeline_mode<synchronous>, transform_indices = @transform_15, window_bounds = array<i64: 1, 32>}, {pipeline_mode = #tpu.pipeline_mode<synchronous>, transform_indices = @transform_16, window_bounds = array<i64: 32, 128>}, {pipeline_mode = #tpu.pipeline_mode<synchronous>, transform_indices = @transform_17, window_bounds = array<i64: 1, 128>}, {pipeline_mode = #tpu.pipeline_mode<synchronous>, transform_indices = @transform_18, window_bounds = array<i64: 128, 32>}, {pipeline_mode = #tpu.pipeline_mode<synchronous>, transform_indices = @transform_19, window_bounds = array<i64: 1, 32>}, {pipeline_mode = #tpu.pipeline_mode<synchronous>, transform_indices = @transform_20, window_bounds = array<i64: 1, 32>}, {pipeline_mode = #tpu.pipeline_mode<synchronous>, transform_indices = @transform_21, window_bounds = array<i64: 1, 32>}, {transform_indices = @transform_22, window_bounds = array<i64: 1, 8, 32>}]} {
    %c0 = arith.constant 0 : index
    %c0_0 = arith.constant 0 : index
    %0 = vector.load %arg1[%c0, %c0_0] : memref<8x1xi32, #tpu.memory_space<vmem>>, vector<8x1xi32>
    %1 = tpu.iota {dimensions = array<i32: 1>} : vector<8x50xi32>
    %2 = vector.broadcast %0 : vector<8x1xi32> to vector<8x50xi32>
    %3 = arith.cmpi eq, %1, %2 : vector<8x50xi32>
    %4 = arith.extui %3 : vector<8x50xi1> to vector<8x50xi32>
    %5 = arith.sitofp %4 : vector<8x50xi32> to vector<8x50xf32>
    %c0_1 = arith.constant 0 : index
    %c0_2 = arith.constant 0 : index
    %6 = vector.load %arg2[%c0_1, %c0_2] : memref<50x32xf32, #tpu.memory_space<vmem>>, vector<50x32xf32>
    %cst = arith.constant dense<0.000000e+00> : vector<8x32xf32>
    %7 = tpu.matmul %5, %6, %cst {dimension_numbers = #tpu.dot_dimension_numbers<[1], [0], [0], [1], [0, 0, 1, 1], [], []>} : vector<8x50xf32>, vector<50x32xf32>, vector<8x32xf32> -> vector<8x32xf32>
    %cst_3 = arith.constant 5.65685415 : f32
    %8 = vector.broadcast %cst_3 : f32 to vector<8x32xf32>
    %9 = arith.mulf %7, %8 : vector<8x32xf32>
    %c0_4 = arith.constant 0 : index
    %c0_5 = arith.constant 0 : index
    %10 = vector.load %arg3[%c0_4, %c0_5] : memref<8x32xf32, #tpu.memory_space<vmem>>, vector<8x32xf32>
    %11 = arith.addf %9, %10 : vector<8x32xf32>
    %c0_6 = arith.constant 0 : index
    %c0_7 = arith.constant 0 : index
    %c0_8 = arith.constant 0 : index
    %12 = vector.load %arg4[%c0_6, %c0_7, %c0_8] : memref<1x8x32xf32, #tpu.memory_space<vmem>>, vector<1x8x32xf32>
    %13 = vector.shape_cast %12 : vector<1x8x32xf32> to vector<8x32xf32>
    %c0_9 = arith.constant 0 : index
    %c0_10 = arith.constant 0 : index
    %14 = vector.load %arg5[%c0_9, %c0_10] : memref<8x8xf32, #tpu.memory_space<vmem>>, vector<8x8xf32>
    %c0_11 = arith.constant 0 : index
    %c0_12 = arith.constant 0 : index
    %15 = vector.load %arg6[%c0_11, %c0_12] : memref<32x128xf32, #tpu.memory_space<vmem>>, vector<32x128xf32>
    %cst_13 = arith.constant dense<0.000000e+00> : vector<8x128xf32>
    %16 = tpu.matmul %13, %15, %cst_13 {dimension_numbers = #tpu.dot_dimension_numbers<[1], [0], [0], [1], [0, 0, 1, 1], [], []>} : vector<8x32xf32>, vector<32x128xf32>, vector<8x128xf32> -> vector<8x128xf32>
    %17 = vector.extract_strided_slice %16 {offsets = [0, 0], sizes = [8, 32], strides = [1, 1]} : vector<8x128xf32> to vector<8x32xf32>
    %18 = vector.extract_strided_slice %16 {offsets = [0, 32], sizes = [8, 32], strides = [1, 1]} : vector<8x128xf32> to vector<8x32xf32>
    %19 = vector.extract_strided_slice %16 {offsets = [0, 64], sizes = [8, 32], strides = [1, 1]} : vector<8x128xf32> to vector<8x32xf32>
    %20 = vector.extract_strided_slice %16 {offsets = [0, 96], sizes = [8, 32], strides = [1, 1]} : vector<8x128xf32> to vector<8x32xf32>
    %21 = vector.extract_strided_slice %17 {offsets = [0, 0], sizes = [8, 8], strides = [1, 1]} : vector<8x32xf32> to vector<8x8xf32>
    %22 = vector.extract_strided_slice %17 {offsets = [0, 8], sizes = [8, 8], strides = [1, 1]} : vector<8x32xf32> to vector<8x8xf32>
    %23 = vector.extract_strided_slice %17 {offsets = [0, 16], sizes = [8, 8], strides = [1, 1]} : vector<8x32xf32> to vector<8x8xf32>
    %24 = vector.extract_strided_slice %17 {offsets = [0, 24], sizes = [8, 8], strides = [1, 1]} : vector<8x32xf32> to vector<8x8xf32>
    %25 = vector.shape_cast %21 : vector<8x8xf32> to vector<1x8x8xf32>
    %26 = vector.shape_cast %22 : vector<8x8xf32> to vector<1x8x8xf32>
    %27 = vector.shape_cast %23 : vector<8x8xf32> to vector<1x8x8xf32>
    %28 = vector.shape_cast %24 : vector<8x8xf32> to vector<1x8x8xf32>
    %29 = tpu.concatenate %25, %26, %27, %28 in 0 : vector<1x8x8xf32>, vector<1x8x8xf32>, vector<1x8x8xf32>, vector<1x8x8xf32> -> vector<4x8x8xf32>
    %30 = vector.extract_strided_slice %18 {offsets = [0, 0], sizes = [8, 8], strides = [1, 1]} : vector<8x32xf32> to vector<8x8xf32>
    %31 = vector.extract_strided_slice %18 {offsets = [0, 8], sizes = [8, 8], strides = [1, 1]} : vector<8x32xf32> to vector<8x8xf32>
    %32 = vector.extract_strided_slice %18 {offsets = [0, 16], sizes = [8, 8], strides = [1, 1]} : vector<8x32xf32> to vector<8x8xf32>
    %33 = vector.extract_strided_slice %18 {offsets = [0, 24], sizes = [8, 8], strides = [1, 1]} : vector<8x32xf32> to vector<8x8xf32>
    %34 = vector.shape_cast %30 : vector<8x8xf32> to vector<1x8x8xf32>
    %35 = vector.shape_cast %31 : vector<8x8xf32> to vector<1x8x8xf32>
    %36 = vector.shape_cast %32 : vector<8x8xf32> to vector<1x8x8xf32>
    %37 = vector.shape_cast %33 : vector<8x8xf32> to vector<1x8x8xf32>
    %38 = tpu.concatenate %34, %35, %36, %37 in 0 : vector<1x8x8xf32>, vector<1x8x8xf32>, vector<1x8x8xf32>, vector<1x8x8xf32> -> vector<4x8x8xf32>
    %39 = vector.extract_strided_slice %19 {offsets = [0, 0], sizes = [8, 8], strides = [1, 1]} : vector<8x32xf32> to vector<8x8xf32>
    %40 = vector.extract_strided_slice %19 {offsets = [0, 8], sizes = [8, 8], strides = [1, 1]} : vector<8x32xf32> to vector<8x8xf32>
    %41 = vector.extract_strided_slice %19 {offsets = [0, 16], sizes = [8, 8], strides = [1, 1]} : vector<8x32xf32> to vector<8x8xf32>
    %42 = vector.extract_strided_slice %19 {offsets = [0, 24], sizes = [8, 8], strides = [1, 1]} : vector<8x32xf32> to vector<8x8xf32>
    %43 = vector.shape_cast %39 : vector<8x8xf32> to vector<1x8x8xf32>
    %44 = vector.shape_cast %40 : vector<8x8xf32> to vector<1x8x8xf32>
    %45 = vector.shape_cast %41 : vector<8x8xf32> to vector<1x8x8xf32>
    %46 = vector.shape_cast %42 : vector<8x8xf32> to vector<1x8x8xf32>
    %47 = tpu.concatenate %43, %44, %45, %46 in 0 : vector<1x8x8xf32>, vector<1x8x8xf32>, vector<1x8x8xf32>, vector<1x8x8xf32> -> vector<4x8x8xf32>
    "tpu.trace_start"() <{level = 10 : i32, message = "hqd,hkd->hqk"}> : () -> ()
    %cst_14 = arith.constant dense<0.000000e+00> : vector<4x8x8xf32>
    %48 = tpu.matmul %29, %38, %cst_14 {dimension_numbers = #tpu.dot_dimension_numbers<[2], [2], [1], [1], [0, 0, 0, 1, 1, 1], [0], [0]>} : vector<4x8x8xf32>, vector<4x8x8xf32>, vector<4x8x8xf32> -> vector<4x8x8xf32>
    "tpu.trace_stop"() : () -> ()
    %49 = vector.shape_cast %14 : vector<8x8xf32> to vector<1x8x8xf32>
    %50 = vector.broadcast %49 : vector<1x8x8xf32> to vector<4x8x8xf32>
    %51 = arith.addf %48, %50 : vector<4x8x8xf32>
    %cst_15 = arith.constant dense<0xFF800000> : vector<4x8xf32>
    %52 = vector.multi_reduction <maximumf>, %51, %cst_15 [2] : vector<4x8x8xf32> to vector<4x8xf32>
    %53 = vector.shape_cast %52 : vector<4x8xf32> to vector<4x8x1xf32>
    %54 = vector.broadcast %53 : vector<4x8x1xf32> to vector<4x8x8xf32>
    %55 = arith.subf %51, %54 : vector<4x8x8xf32>
    %56 = math.exp %55 : vector<4x8x8xf32>
    %cst_16 = arith.constant dense<0.000000e+00> : vector<4x8xf32>
    %57 = vector.multi_reduction <add>, %56, %cst_16 [2] : vector<4x8x8xf32> to vector<4x8xf32>
    %58 = vector.shape_cast %57 : vector<4x8xf32> to vector<4x8x1xf32>
    %59 = tpu.reciprocal %58 {approx = true} : vector<4x8x1xf32> -> vector<4x8x1xf32>
    %60 = vector.broadcast %59 : vector<4x8x1xf32> to vector<4x8x8xf32>
    %61 = arith.mulf %56, %60 : vector<4x8x8xf32>
    "tpu.trace_start"() <{level = 10 : i32, message = "hqk,hkd->hqd"}> : () -> ()
    %cst_17 = arith.constant dense<0.000000e+00> : vector<4x8x8xf32>
    %62 = tpu.matmul %61, %47, %cst_17 {dimension_numbers = #tpu.dot_dimension_numbers<[2], [1], [1], [2], [0, 0, 0, 1, 1, 2], [0], [0]>} : vector<4x8x8xf32>, vector<4x8x8xf32>, vector<4x8x8xf32> -> vector<4x8x8xf32>
    "tpu.trace_stop"() : () -> ()
    %63 = vector.extract_strided_slice %62 {offsets = [0, 0, 0], sizes = [1, 8, 8], strides = [1, 1, 1]} : vector<4x8x8xf32> to vector<1x8x8xf32>
    %64 = vector.shape_cast %63 : vector<1x8x8xf32> to vector<8x8xf32>
    %65 = vector.extract_strided_slice %62 {offsets = [1, 0, 0], sizes = [1, 8, 8], strides = [1, 1, 1]} : vector<4x8x8xf32> to vector<1x8x8xf32>
    %66 = vector.shape_cast %65 : vector<1x8x8xf32> to vector<8x8xf32>
    %67 = vector.extract_strided_slice %62 {offsets = [2, 0, 0], sizes = [1, 8, 8], strides = [1, 1, 1]} : vector<4x8x8xf32> to vector<1x8x8xf32>
    %68 = vector.shape_cast %67 : vector<1x8x8xf32> to vector<8x8xf32>
    %69 = vector.extract_strided_slice %62 {offsets = [3, 0, 0], sizes = [1, 8, 8], strides = [1, 1, 1]} : vector<4x8x8xf32> to vector<1x8x8xf32>
    %70 = vector.shape_cast %69 : vector<1x8x8xf32> to vector<8x8xf32>
    %71 = tpu.concatenate %64, %66, %68, %70 in 1 : vector<8x8xf32>, vector<8x8xf32>, vector<8x8xf32>, vector<8x8xf32> -> vector<8x32xf32>
    %c0_18 = arith.constant 0 : index
    %c0_19 = arith.constant 0 : index
    %72 = vector.load %arg7[%c0_18, %c0_19] : memref<32x32xf32, #tpu.memory_space<vmem>>, vector<32x32xf32>
    %cst_20 = arith.constant dense<0.000000e+00> : vector<8x32xf32>
    %73 = tpu.matmul %71, %72, %cst_20 {dimension_numbers = #tpu.dot_dimension_numbers<[1], [0], [0], [1], [0, 0, 1, 1], [], []>} : vector<8x32xf32>, vector<32x32xf32>, vector<8x32xf32> -> vector<8x32xf32>
    %c0_21 = arith.constant 0 : index
    %c0_22 = arith.constant 0 : index
    %74 = vector.load %arg8[%c0_21, %c0_22] : memref<1x32xf32, #tpu.memory_space<vmem>>, vector<1x32xf32>
    %75 = vector.broadcast %74 : vector<1x32xf32> to vector<8x32xf32>
    %76 = arith.addf %73, %75 : vector<8x32xf32>
    %77 = arith.addf %76, %13 : vector<8x32xf32>
    %c0_23 = arith.constant 0 : index
    %c0_24 = arith.constant 0 : index
    %78 = vector.load %arg9[%c0_23, %c0_24] : memref<1x32xf32, #tpu.memory_space<vmem>>, vector<1x32xf32>
    %c0_25 = arith.constant 0 : index
    %c0_26 = arith.constant 0 : index
    %79 = vector.load %arg10[%c0_25, %c0_26] : memref<1x32xf32, #tpu.memory_space<vmem>>, vector<1x32xf32>
    %cst_27 = arith.constant dense<0.000000e+00> : vector<8xf32>
    %80 = vector.multi_reduction <add>, %77, %cst_27 [1] : vector<8x32xf32> to vector<8xf32>
    %81 = vector.shape_cast %80 : vector<8xf32> to vector<8x1xf32>
    %cst_28 = arith.constant 3.200000e+01 : f32
    %82 = vector.broadcast %cst_28 : f32 to vector<8x1xf32>
    %83 = arith.divf %81, %82 : vector<8x1xf32>
    %84 = vector.broadcast %83 : vector<8x1xf32> to vector<8x32xf32>
    %85 = arith.subf %77, %84 : vector<8x32xf32>
    %86 = arith.mulf %85, %85 : vector<8x32xf32>
    %cst_29 = arith.constant dense<0.000000e+00> : vector<8xf32>
    %87 = vector.multi_reduction <add>, %86, %cst_29 [1] : vector<8x32xf32> to vector<8xf32>
    %88 = vector.shape_cast %87 : vector<8xf32> to vector<8x1xf32>
    %cst_30 = arith.constant 3.200000e+01 : f32
    %89 = vector.broadcast %cst_30 : f32 to vector<8x1xf32>
    %90 = arith.divf %88, %89 : vector<8x1xf32>
    %91 = vector.broadcast %83 : vector<8x1xf32> to vector<8x32xf32>
    %92 = arith.subf %77, %91 : vector<8x32xf32>
    %cst_31 = arith.constant 9.99999974E-6 : f32
    %93 = vector.broadcast %cst_31 : f32 to vector<8x1xf32>
    %94 = arith.addf %90, %93 : vector<8x1xf32>
    %95 = math.rsqrt %94 : vector<8x1xf32>
    %96 = vector.broadcast %95 : vector<8x1xf32> to vector<8x32xf32>
    %97 = arith.mulf %92, %96 : vector<8x32xf32>
    %98 = vector.broadcast %78 : vector<1x32xf32> to vector<8x32xf32>
    %99 = arith.mulf %97, %98 : vector<8x32xf32>
    %100 = vector.broadcast %79 : vector<1x32xf32> to vector<8x32xf32>
    %101 = arith.addf %99, %100 : vector<8x32xf32>
    %c0_32 = arith.constant 0 : index
    %c0_33 = arith.constant 0 : index
    %102 = vector.load %arg12[%c0_32, %c0_33] : memref<32x32xf32, #tpu.memory_space<vmem>>, vector<32x32xf32>
    %cst_34 = arith.constant dense<0.000000e+00> : vector<8x32xf32>
    %103 = tpu.matmul %101, %102, %cst_34 {dimension_numbers = #tpu.dot_dimension_numbers<[1], [0], [0], [1], [0, 0, 1, 1], [], []>} : vector<8x32xf32>, vector<32x32xf32>, vector<8x32xf32> -> vector<8x32xf32>
    %c0_35 = arith.constant 0 : index
    %c0_36 = arith.constant 0 : index
    %104 = vector.load %arg11[%c0_35, %c0_36] : memref<32x32xf32, #tpu.memory_space<vmem>>, vector<32x32xf32>
    %cst_37 = arith.constant dense<0.000000e+00> : vector<8x32xf32>
    %105 = tpu.matmul %11, %104, %cst_37 {dimension_numbers = #tpu.dot_dimension_numbers<[1], [0], [0], [1], [0, 0, 1, 1], [], []>} : vector<8x32xf32>, vector<32x32xf32>, vector<8x32xf32> -> vector<8x32xf32>
    %106 = vector.extract_strided_slice %105 {offsets = [0, 0], sizes = [8, 8], strides = [1, 1]} : vector<8x32xf32> to vector<8x8xf32>
    %107 = vector.extract_strided_slice %105 {offsets = [0, 8], sizes = [8, 8], strides = [1, 1]} : vector<8x32xf32> to vector<8x8xf32>
    %108 = vector.extract_strided_slice %105 {offsets = [0, 16], sizes = [8, 8], strides = [1, 1]} : vector<8x32xf32> to vector<8x8xf32>
    %109 = vector.extract_strided_slice %105 {offsets = [0, 24], sizes = [8, 8], strides = [1, 1]} : vector<8x32xf32> to vector<8x8xf32>
    %110 = vector.shape_cast %106 : vector<8x8xf32> to vector<1x8x8xf32>
    %111 = vector.shape_cast %107 : vector<8x8xf32> to vector<1x8x8xf32>
    %112 = vector.shape_cast %108 : vector<8x8xf32> to vector<1x8x8xf32>
    %113 = vector.shape_cast %109 : vector<8x8xf32> to vector<1x8x8xf32>
    %114 = tpu.concatenate %110, %111, %112, %113 in 0 : vector<1x8x8xf32>, vector<1x8x8xf32>, vector<1x8x8xf32>, vector<1x8x8xf32> -> vector<4x8x8xf32>
    %115 = vector.extract_strided_slice %20 {offsets = [0, 0], sizes = [8, 8], strides = [1, 1]} : vector<8x32xf32> to vector<8x8xf32>
    %116 = vector.extract_strided_slice %20 {offsets = [0, 8], sizes = [8, 8], strides = [1, 1]} : vector<8x32xf32> to vector<8x8xf32>
    %117 = vector.extract_strided_slice %20 {offsets = [0, 16], sizes = [8, 8], strides = [1, 1]} : vector<8x32xf32> to vector<8x8xf32>
    %118 = vector.extract_strided_slice %20 {offsets = [0, 24], sizes = [8, 8], strides = [1, 1]} : vector<8x32xf32> to vector<8x8xf32>
    %119 = vector.shape_cast %115 : vector<8x8xf32> to vector<1x8x8xf32>
    %120 = vector.shape_cast %116 : vector<8x8xf32> to vector<1x8x8xf32>
    %121 = vector.shape_cast %117 : vector<8x8xf32> to vector<1x8x8xf32>
    %122 = vector.shape_cast %118 : vector<8x8xf32> to vector<1x8x8xf32>
    %123 = tpu.concatenate %119, %120, %121, %122 in 0 : vector<1x8x8xf32>, vector<1x8x8xf32>, vector<1x8x8xf32>, vector<1x8x8xf32> -> vector<4x8x8xf32>
    %124 = vector.extract_strided_slice %103 {offsets = [0, 0], sizes = [8, 8], strides = [1, 1]} : vector<8x32xf32> to vector<8x8xf32>
    %125 = vector.extract_strided_slice %103 {offsets = [0, 8], sizes = [8, 8], strides = [1, 1]} : vector<8x32xf32> to vector<8x8xf32>
    %126 = vector.extract_strided_slice %103 {offsets = [0, 16], sizes = [8, 8], strides = [1, 1]} : vector<8x32xf32> to vector<8x8xf32>
    %127 = vector.extract_strided_slice %103 {offsets = [0, 24], sizes = [8, 8], strides = [1, 1]} : vector<8x32xf32> to vector<8x8xf32>
    %128 = vector.shape_cast %124 : vector<8x8xf32> to vector<1x8x8xf32>
    %129 = vector.shape_cast %125 : vector<8x8xf32> to vector<1x8x8xf32>
    %130 = vector.shape_cast %126 : vector<8x8xf32> to vector<1x8x8xf32>
    %131 = vector.shape_cast %127 : vector<8x8xf32> to vector<1x8x8xf32>
    %132 = tpu.concatenate %128, %129, %130, %131 in 0 : vector<1x8x8xf32>, vector<1x8x8xf32>, vector<1x8x8xf32>, vector<1x8x8xf32> -> vector<4x8x8xf32>
    "tpu.trace_start"() <{level = 10 : i32, message = "hqd,hkd->hqk"}> : () -> ()
    %cst_38 = arith.constant dense<0.000000e+00> : vector<4x8x8xf32>
    %133 = tpu.matmul %114, %123, %cst_38 {dimension_numbers = #tpu.dot_dimension_numbers<[2], [2], [1], [1], [0, 0, 0, 1, 1, 1], [0], [0]>} : vector<4x8x8xf32>, vector<4x8x8xf32>, vector<4x8x8xf32> -> vector<4x8x8xf32>
    "tpu.trace_stop"() : () -> ()
    %cst_39 = arith.constant dense<0xFF800000> : vector<4x8xf32>
    %134 = vector.multi_reduction <maximumf>, %133, %cst_39 [2] : vector<4x8x8xf32> to vector<4x8xf32>
    %135 = vector.shape_cast %134 : vector<4x8xf32> to vector<4x8x1xf32>
    %136 = vector.broadcast %135 : vector<4x8x1xf32> to vector<4x8x8xf32>
    %137 = arith.subf %133, %136 : vector<4x8x8xf32>
    %138 = math.exp %137 : vector<4x8x8xf32>
    %cst_40 = arith.constant dense<0.000000e+00> : vector<4x8xf32>
    %139 = vector.multi_reduction <add>, %138, %cst_40 [2] : vector<4x8x8xf32> to vector<4x8xf32>
    %140 = vector.shape_cast %139 : vector<4x8xf32> to vector<4x8x1xf32>
    %141 = tpu.reciprocal %140 {approx = true} : vector<4x8x1xf32> -> vector<4x8x1xf32>
    %142 = vector.broadcast %141 : vector<4x8x1xf32> to vector<4x8x8xf32>
    %143 = arith.mulf %138, %142 : vector<4x8x8xf32>
    "tpu.trace_start"() <{level = 10 : i32, message = "hqk,hkd->hqd"}> : () -> ()
    %cst_41 = arith.constant dense<0.000000e+00> : vector<4x8x8xf32>
    %144 = tpu.matmul %143, %132, %cst_41 {dimension_numbers = #tpu.dot_dimension_numbers<[2], [1], [1], [2], [0, 0, 0, 1, 1, 2], [0], [0]>} : vector<4x8x8xf32>, vector<4x8x8xf32>, vector<4x8x8xf32> -> vector<4x8x8xf32>
    "tpu.trace_stop"() : () -> ()
    %145 = vector.extract_strided_slice %144 {offsets = [0, 0, 0], sizes = [1, 8, 8], strides = [1, 1, 1]} : vector<4x8x8xf32> to vector<1x8x8xf32>
    %146 = vector.shape_cast %145 : vector<1x8x8xf32> to vector<8x8xf32>
    %147 = vector.extract_strided_slice %144 {offsets = [1, 0, 0], sizes = [1, 8, 8], strides = [1, 1, 1]} : vector<4x8x8xf32> to vector<1x8x8xf32>
    %148 = vector.shape_cast %147 : vector<1x8x8xf32> to vector<8x8xf32>
    %149 = vector.extract_strided_slice %144 {offsets = [2, 0, 0], sizes = [1, 8, 8], strides = [1, 1, 1]} : vector<4x8x8xf32> to vector<1x8x8xf32>
    %150 = vector.shape_cast %149 : vector<1x8x8xf32> to vector<8x8xf32>
    %151 = vector.extract_strided_slice %144 {offsets = [3, 0, 0], sizes = [1, 8, 8], strides = [1, 1, 1]} : vector<4x8x8xf32> to vector<1x8x8xf32>
    %152 = vector.shape_cast %151 : vector<1x8x8xf32> to vector<8x8xf32>
    %153 = tpu.concatenate %146, %148, %150, %152 in 1 : vector<8x8xf32>, vector<8x8xf32>, vector<8x8xf32>, vector<8x8xf32> -> vector<8x32xf32>
    %c0_42 = arith.constant 0 : index
    %c0_43 = arith.constant 0 : index
    %154 = vector.load %arg13[%c0_42, %c0_43] : memref<32x32xf32, #tpu.memory_space<vmem>>, vector<32x32xf32>
    %cst_44 = arith.constant dense<0.000000e+00> : vector<8x32xf32>
    %155 = tpu.matmul %153, %154, %cst_44 {dimension_numbers = #tpu.dot_dimension_numbers<[1], [0], [0], [1], [0, 0, 1, 1], [], []>} : vector<8x32xf32>, vector<32x32xf32>, vector<8x32xf32> -> vector<8x32xf32>
    %c0_45 = arith.constant 0 : index
    %c0_46 = arith.constant 0 : index
    %156 = vector.load %arg14[%c0_45, %c0_46] : memref<1x32xf32, #tpu.memory_space<vmem>>, vector<1x32xf32>
    %157 = vector.broadcast %156 : vector<1x32xf32> to vector<8x32xf32>
    %158 = arith.addf %155, %157 : vector<8x32xf32>
    %159 = arith.addf %158, %101 : vector<8x32xf32>
    %c0_47 = arith.constant 0 : index
    %c0_48 = arith.constant 0 : index
    %160 = vector.load %arg15[%c0_47, %c0_48] : memref<1x32xf32, #tpu.memory_space<vmem>>, vector<1x32xf32>
    %c0_49 = arith.constant 0 : index
    %c0_50 = arith.constant 0 : index
    %161 = vector.load %arg16[%c0_49, %c0_50] : memref<1x32xf32, #tpu.memory_space<vmem>>, vector<1x32xf32>
    %cst_51 = arith.constant dense<0.000000e+00> : vector<8xf32>
    %162 = vector.multi_reduction <add>, %159, %cst_51 [1] : vector<8x32xf32> to vector<8xf32>
    %163 = vector.shape_cast %162 : vector<8xf32> to vector<8x1xf32>
    %cst_52 = arith.constant 3.200000e+01 : f32
    %164 = vector.broadcast %cst_52 : f32 to vector<8x1xf32>
    %165 = arith.divf %163, %164 : vector<8x1xf32>
    %166 = vector.broadcast %165 : vector<8x1xf32> to vector<8x32xf32>
    %167 = arith.subf %159, %166 : vector<8x32xf32>
    %168 = arith.mulf %167, %167 : vector<8x32xf32>
    %cst_53 = arith.constant dense<0.000000e+00> : vector<8xf32>
    %169 = vector.multi_reduction <add>, %168, %cst_53 [1] : vector<8x32xf32> to vector<8xf32>
    %170 = vector.shape_cast %169 : vector<8xf32> to vector<8x1xf32>
    %cst_54 = arith.constant 3.200000e+01 : f32
    %171 = vector.broadcast %cst_54 : f32 to vector<8x1xf32>
    %172 = arith.divf %170, %171 : vector<8x1xf32>
    %173 = vector.broadcast %165 : vector<8x1xf32> to vector<8x32xf32>
    %174 = arith.subf %159, %173 : vector<8x32xf32>
    %cst_55 = arith.constant 9.99999974E-6 : f32
    %175 = vector.broadcast %cst_55 : f32 to vector<8x1xf32>
    %176 = arith.addf %172, %175 : vector<8x1xf32>
    %177 = math.rsqrt %176 : vector<8x1xf32>
    %178 = vector.broadcast %177 : vector<8x1xf32> to vector<8x32xf32>
    %179 = arith.mulf %174, %178 : vector<8x32xf32>
    %180 = vector.broadcast %160 : vector<1x32xf32> to vector<8x32xf32>
    %181 = arith.mulf %179, %180 : vector<8x32xf32>
    %182 = vector.broadcast %161 : vector<1x32xf32> to vector<8x32xf32>
    %183 = arith.addf %181, %182 : vector<8x32xf32>
    %c0_56 = arith.constant 0 : index
    %c0_57 = arith.constant 0 : index
    %184 = vector.load %arg17[%c0_56, %c0_57] : memref<32x128xf32, #tpu.memory_space<vmem>>, vector<32x128xf32>
    %cst_58 = arith.constant dense<0.000000e+00> : vector<8x128xf32>
    %185 = tpu.matmul %183, %184, %cst_58 {dimension_numbers = #tpu.dot_dimension_numbers<[1], [0], [0], [1], [0, 0, 1, 1], [], []>} : vector<8x32xf32>, vector<32x128xf32>, vector<8x128xf32> -> vector<8x128xf32>
    %c0_59 = arith.constant 0 : index
    %c0_60 = arith.constant 0 : index
    %186 = vector.load %arg18[%c0_59, %c0_60] : memref<1x128xf32, #tpu.memory_space<vmem>>, vector<1x128xf32>
    %187 = vector.broadcast %186 : vector<1x128xf32> to vector<8x128xf32>
    %188 = arith.addf %185, %187 : vector<8x128xf32>
    %cst_61 = arith.constant 0.000000e+00 : f32
    %189 = vector.broadcast %cst_61 : f32 to vector<8x128xf32>
    %190 = arith.maximumf %188, %189 : vector<8x128xf32>
    %c0_62 = arith.constant 0 : index
    %c0_63 = arith.constant 0 : index
    %191 = vector.load %arg19[%c0_62, %c0_63] : memref<128x32xf32, #tpu.memory_space<vmem>>, vector<128x32xf32>
    %cst_64 = arith.constant dense<0.000000e+00> : vector<8x32xf32>
    %192 = tpu.matmul %190, %191, %cst_64 {dimension_numbers = #tpu.dot_dimension_numbers<[1], [0], [0], [1], [0, 0, 1, 1], [], []>} : vector<8x128xf32>, vector<128x32xf32>, vector<8x32xf32> -> vector<8x32xf32>
    %c0_65 = arith.constant 0 : index
    %c0_66 = arith.constant 0 : index
    %193 = vector.load %arg20[%c0_65, %c0_66] : memref<1x32xf32, #tpu.memory_space<vmem>>, vector<1x32xf32>
    %194 = vector.broadcast %193 : vector<1x32xf32> to vector<8x32xf32>
    %195 = arith.addf %192, %194 : vector<8x32xf32>
    %196 = arith.addf %195, %183 : vector<8x32xf32>
    %c0_67 = arith.constant 0 : index
    %c0_68 = arith.constant 0 : index
    %197 = vector.load %arg21[%c0_67, %c0_68] : memref<1x32xf32, #tpu.memory_space<vmem>>, vector<1x32xf32>
    %c0_69 = arith.constant 0 : index
    %c0_70 = arith.constant 0 : index
    %198 = vector.load %arg22[%c0_69, %c0_70] : memref<1x32xf32, #tpu.memory_space<vmem>>, vector<1x32xf32>
    %cst_71 = arith.constant dense<0.000000e+00> : vector<8xf32>
    %199 = vector.multi_reduction <add>, %196, %cst_71 [1] : vector<8x32xf32> to vector<8xf32>
    %200 = vector.shape_cast %199 : vector<8xf32> to vector<8x1xf32>
    %cst_72 = arith.constant 3.200000e+01 : f32
    %201 = vector.broadcast %cst_72 : f32 to vector<8x1xf32>
    %202 = arith.divf %200, %201 : vector<8x1xf32>
    %203 = vector.broadcast %202 : vector<8x1xf32> to vector<8x32xf32>
    %204 = arith.subf %196, %203 : vector<8x32xf32>
    %205 = arith.mulf %204, %204 : vector<8x32xf32>
    %cst_73 = arith.constant dense<0.000000e+00> : vector<8xf32>
    %206 = vector.multi_reduction <add>, %205, %cst_73 [1] : vector<8x32xf32> to vector<8xf32>
    %207 = vector.shape_cast %206 : vector<8xf32> to vector<8x1xf32>
    %cst_74 = arith.constant 3.200000e+01 : f32
    %208 = vector.broadcast %cst_74 : f32 to vector<8x1xf32>
    %209 = arith.divf %207, %208 : vector<8x1xf32>
    %210 = vector.broadcast %202 : vector<8x1xf32> to vector<8x32xf32>
    %211 = arith.subf %196, %210 : vector<8x32xf32>
    %cst_75 = arith.constant 9.99999974E-6 : f32
    %212 = vector.broadcast %cst_75 : f32 to vector<8x1xf32>
    %213 = arith.addf %209, %212 : vector<8x1xf32>
    %214 = math.rsqrt %213 : vector<8x1xf32>
    %215 = vector.broadcast %214 : vector<8x1xf32> to vector<8x32xf32>
    %216 = arith.mulf %211, %215 : vector<8x32xf32>
    %217 = vector.broadcast %197 : vector<1x32xf32> to vector<8x32xf32>
    %218 = arith.mulf %216, %217 : vector<8x32xf32>
    %219 = vector.broadcast %198 : vector<1x32xf32> to vector<8x32xf32>
    %220 = arith.addf %218, %219 : vector<8x32xf32>
    %c0_76 = arith.constant 0 : index
    %c0_77 = arith.constant 0 : index
    %221 = vector.load %arg11[%c0_76, %c0_77] : memref<32x32xf32, #tpu.memory_space<vmem>>, vector<32x32xf32>
    %cst_78 = arith.constant dense<0.000000e+00> : vector<8x32xf32>
    %222 = tpu.matmul %220, %221, %cst_78 {dimension_numbers = #tpu.dot_dimension_numbers<[1], [0], [0], [1], [0, 0, 1, 1], [], []>} : vector<8x32xf32>, vector<32x32xf32>, vector<8x32xf32> -> vector<8x32xf32>
    %223 = vector.extract_strided_slice %222 {offsets = [0, 0], sizes = [8, 8], strides = [1, 1]} : vector<8x32xf32> to vector<8x8xf32>
    %224 = vector.extract_strided_slice %222 {offsets = [0, 8], sizes = [8, 8], strides = [1, 1]} : vector<8x32xf32> to vector<8x8xf32>
    %225 = vector.extract_strided_slice %222 {offsets = [0, 16], sizes = [8, 8], strides = [1, 1]} : vector<8x32xf32> to vector<8x8xf32>
    %226 = vector.extract_strided_slice %222 {offsets = [0, 24], sizes = [8, 8], strides = [1, 1]} : vector<8x32xf32> to vector<8x8xf32>
    %227 = vector.shape_cast %223 : vector<8x8xf32> to vector<1x8x8xf32>
    %228 = vector.shape_cast %224 : vector<8x8xf32> to vector<1x8x8xf32>
    %229 = vector.shape_cast %225 : vector<8x8xf32> to vector<1x8x8xf32>
    %230 = vector.shape_cast %226 : vector<8x8xf32> to vector<1x8x8xf32>
    %231 = tpu.concatenate %227, %228, %229, %230 in 0 : vector<1x8x8xf32>, vector<1x8x8xf32>, vector<1x8x8xf32>, vector<1x8x8xf32> -> vector<4x8x8xf32>
    %232 = vector.extract_strided_slice %20 {offsets = [0, 0], sizes = [8, 8], strides = [1, 1]} : vector<8x32xf32> to vector<8x8xf32>
    %233 = vector.extract_strided_slice %20 {offsets = [0, 8], sizes = [8, 8], strides = [1, 1]} : vector<8x32xf32> to vector<8x8xf32>
    %234 = vector.extract_strided_slice %20 {offsets = [0, 16], sizes = [8, 8], strides = [1, 1]} : vector<8x32xf32> to vector<8x8xf32>
    %235 = vector.extract_strided_slice %20 {offsets = [0, 24], sizes = [8, 8], strides = [1, 1]} : vector<8x32xf32> to vector<8x8xf32>
    %236 = vector.shape_cast %232 : vector<8x8xf32> to vector<1x8x8xf32>
    %237 = vector.shape_cast %233 : vector<8x8xf32> to vector<1x8x8xf32>
    %238 = vector.shape_cast %234 : vector<8x8xf32> to vector<1x8x8xf32>
    %239 = vector.shape_cast %235 : vector<8x8xf32> to vector<1x8x8xf32>
    %240 = tpu.concatenate %236, %237, %238, %239 in 0 : vector<1x8x8xf32>, vector<1x8x8xf32>, vector<1x8x8xf32>, vector<1x8x8xf32> -> vector<4x8x8xf32>
    %241 = vector.extract_strided_slice %103 {offsets = [0, 0], sizes = [8, 8], strides = [1, 1]} : vector<8x32xf32> to vector<8x8xf32>
    %242 = vector.extract_strided_slice %103 {offsets = [0, 8], sizes = [8, 8], strides = [1, 1]} : vector<8x32xf32> to vector<8x8xf32>
    %243 = vector.extract_strided_slice %103 {offsets = [0, 16], sizes = [8, 8], strides = [1, 1]} : vector<8x32xf32> to vector<8x8xf32>
    %244 = vector.extract_strided_slice %103 {offsets = [0, 24], sizes = [8, 8], strides = [1, 1]} : vector<8x32xf32> to vector<8x8xf32>
    %245 = vector.shape_cast %241 : vector<8x8xf32> to vector<1x8x8xf32>
    %246 = vector.shape_cast %242 : vector<8x8xf32> to vector<1x8x8xf32>
    %247 = vector.shape_cast %243 : vector<8x8xf32> to vector<1x8x8xf32>
    %248 = vector.shape_cast %244 : vector<8x8xf32> to vector<1x8x8xf32>
    %249 = tpu.concatenate %245, %246, %247, %248 in 0 : vector<1x8x8xf32>, vector<1x8x8xf32>, vector<1x8x8xf32>, vector<1x8x8xf32> -> vector<4x8x8xf32>
    "tpu.trace_start"() <{level = 10 : i32, message = "hqd,hkd->hqk"}> : () -> ()
    %cst_79 = arith.constant dense<0.000000e+00> : vector<4x8x8xf32>
    %250 = tpu.matmul %231, %240, %cst_79 {dimension_numbers = #tpu.dot_dimension_numbers<[2], [2], [1], [1], [0, 0, 0, 1, 1, 1], [0], [0]>} : vector<4x8x8xf32>, vector<4x8x8xf32>, vector<4x8x8xf32> -> vector<4x8x8xf32>
    "tpu.trace_stop"() : () -> ()
    %cst_80 = arith.constant dense<0xFF800000> : vector<4x8xf32>
    %251 = vector.multi_reduction <maximumf>, %250, %cst_80 [2] : vector<4x8x8xf32> to vector<4x8xf32>
    %252 = vector.shape_cast %251 : vector<4x8xf32> to vector<4x8x1xf32>
    %253 = vector.broadcast %252 : vector<4x8x1xf32> to vector<4x8x8xf32>
    %254 = arith.subf %250, %253 : vector<4x8x8xf32>
    %255 = math.exp %254 : vector<4x8x8xf32>
    %cst_81 = arith.constant dense<0.000000e+00> : vector<4x8xf32>
    %256 = vector.multi_reduction <add>, %255, %cst_81 [2] : vector<4x8x8xf32> to vector<4x8xf32>
    %257 = vector.shape_cast %256 : vector<4x8xf32> to vector<4x8x1xf32>
    %258 = tpu.reciprocal %257 {approx = true} : vector<4x8x1xf32> -> vector<4x8x1xf32>
    %259 = vector.broadcast %258 : vector<4x8x1xf32> to vector<4x8x8xf32>
    %260 = arith.mulf %255, %259 : vector<4x8x8xf32>
    "tpu.trace_start"() <{level = 10 : i32, message = "hqk,hkd->hqd"}> : () -> ()
    %cst_82 = arith.constant dense<0.000000e+00> : vector<4x8x8xf32>
    %261 = tpu.matmul %260, %249, %cst_82 {dimension_numbers = #tpu.dot_dimension_numbers<[2], [1], [1], [2], [0, 0, 0, 1, 1, 2], [0], [0]>} : vector<4x8x8xf32>, vector<4x8x8xf32>, vector<4x8x8xf32> -> vector<4x8x8xf32>
    "tpu.trace_stop"() : () -> ()
    %262 = vector.extract_strided_slice %261 {offsets = [0, 0, 0], sizes = [1, 8, 8], strides = [1, 1, 1]} : vector<4x8x8xf32> to vector<1x8x8xf32>
    %263 = vector.shape_cast %262 : vector<1x8x8xf32> to vector<8x8xf32>
    %264 = vector.extract_strided_slice %261 {offsets = [1, 0, 0], sizes = [1, 8, 8], strides = [1, 1, 1]} : vector<4x8x8xf32> to vector<1x8x8xf32>
    %265 = vector.shape_cast %264 : vector<1x8x8xf32> to vector<8x8xf32>
    %266 = vector.extract_strided_slice %261 {offsets = [2, 0, 0], sizes = [1, 8, 8], strides = [1, 1, 1]} : vector<4x8x8xf32> to vector<1x8x8xf32>
    %267 = vector.shape_cast %266 : vector<1x8x8xf32> to vector<8x8xf32>
    %268 = vector.extract_strided_slice %261 {offsets = [3, 0, 0], sizes = [1, 8, 8], strides = [1, 1, 1]} : vector<4x8x8xf32> to vector<1x8x8xf32>
    %269 = vector.shape_cast %268 : vector<1x8x8xf32> to vector<8x8xf32>
    %270 = tpu.concatenate %263, %265, %267, %269 in 1 : vector<8x8xf32>, vector<8x8xf32>, vector<8x8xf32>, vector<8x8xf32> -> vector<8x32xf32>
    %c0_83 = arith.constant 0 : index
    %c0_84 = arith.constant 0 : index
    %271 = vector.load %arg13[%c0_83, %c0_84] : memref<32x32xf32, #tpu.memory_space<vmem>>, vector<32x32xf32>
    %cst_85 = arith.constant dense<0.000000e+00> : vector<8x32xf32>
    %272 = tpu.matmul %270, %271, %cst_85 {dimension_numbers = #tpu.dot_dimension_numbers<[1], [0], [0], [1], [0, 0, 1, 1], [], []>} : vector<8x32xf32>, vector<32x32xf32>, vector<8x32xf32> -> vector<8x32xf32>
    %c0_86 = arith.constant 0 : index
    %c0_87 = arith.constant 0 : index
    %273 = vector.load %arg14[%c0_86, %c0_87] : memref<1x32xf32, #tpu.memory_space<vmem>>, vector<1x32xf32>
    %274 = vector.broadcast %273 : vector<1x32xf32> to vector<8x32xf32>
    %275 = arith.addf %272, %274 : vector<8x32xf32>
    %276 = arith.addf %275, %101 : vector<8x32xf32>
    %c0_88 = arith.constant 0 : index
    %c0_89 = arith.constant 0 : index
    %277 = vector.load %arg15[%c0_88, %c0_89] : memref<1x32xf32, #tpu.memory_space<vmem>>, vector<1x32xf32>
    %c0_90 = arith.constant 0 : index
    %c0_91 = arith.constant 0 : index
    %278 = vector.load %arg16[%c0_90, %c0_91] : memref<1x32xf32, #tpu.memory_space<vmem>>, vector<1x32xf32>
    %cst_92 = arith.constant dense<0.000000e+00> : vector<8xf32>
    %279 = vector.multi_reduction <add>, %276, %cst_92 [1] : vector<8x32xf32> to vector<8xf32>
    %280 = vector.shape_cast %279 : vector<8xf32> to vector<8x1xf32>
    %cst_93 = arith.constant 3.200000e+01 : f32
    %281 = vector.broadcast %cst_93 : f32 to vector<8x1xf32>
    %282 = arith.divf %280, %281 : vector<8x1xf32>
    %283 = vector.broadcast %282 : vector<8x1xf32> to vector<8x32xf32>
    %284 = arith.subf %276, %283 : vector<8x32xf32>
    %285 = arith.mulf %284, %284 : vector<8x32xf32>
    %cst_94 = arith.constant dense<0.000000e+00> : vector<8xf32>
    %286 = vector.multi_reduction <add>, %285, %cst_94 [1] : vector<8x32xf32> to vector<8xf32>
    %287 = vector.shape_cast %286 : vector<8xf32> to vector<8x1xf32>
    %cst_95 = arith.constant 3.200000e+01 : f32
    %288 = vector.broadcast %cst_95 : f32 to vector<8x1xf32>
    %289 = arith.divf %287, %288 : vector<8x1xf32>
    %290 = vector.broadcast %282 : vector<8x1xf32> to vector<8x32xf32>
    %291 = arith.subf %276, %290 : vector<8x32xf32>
    %cst_96 = arith.constant 9.99999974E-6 : f32
    %292 = vector.broadcast %cst_96 : f32 to vector<8x1xf32>
    %293 = arith.addf %289, %292 : vector<8x1xf32>
    %294 = math.rsqrt %293 : vector<8x1xf32>
    %295 = vector.broadcast %294 : vector<8x1xf32> to vector<8x32xf32>
    %296 = arith.mulf %291, %295 : vector<8x32xf32>
    %297 = vector.broadcast %277 : vector<1x32xf32> to vector<8x32xf32>
    %298 = arith.mulf %296, %297 : vector<8x32xf32>
    %299 = vector.broadcast %278 : vector<1x32xf32> to vector<8x32xf32>
    %300 = arith.addf %298, %299 : vector<8x32xf32>
    %c0_97 = arith.constant 0 : index
    %c0_98 = arith.constant 0 : index
    %301 = vector.load %arg17[%c0_97, %c0_98] : memref<32x128xf32, #tpu.memory_space<vmem>>, vector<32x128xf32>
    %cst_99 = arith.constant dense<0.000000e+00> : vector<8x128xf32>
    %302 = tpu.matmul %300, %301, %cst_99 {dimension_numbers = #tpu.dot_dimension_numbers<[1], [0], [0], [1], [0, 0, 1, 1], [], []>} : vector<8x32xf32>, vector<32x128xf32>, vector<8x128xf32> -> vector<8x128xf32>
    %c0_100 = arith.constant 0 : index
    %c0_101 = arith.constant 0 : index
    %303 = vector.load %arg18[%c0_100, %c0_101] : memref<1x128xf32, #tpu.memory_space<vmem>>, vector<1x128xf32>
    %304 = vector.broadcast %303 : vector<1x128xf32> to vector<8x128xf32>
    %305 = arith.addf %302, %304 : vector<8x128xf32>
    %cst_102 = arith.constant 0.000000e+00 : f32
    %306 = vector.broadcast %cst_102 : f32 to vector<8x128xf32>
    %307 = arith.maximumf %305, %306 : vector<8x128xf32>
    %c0_103 = arith.constant 0 : index
    %c0_104 = arith.constant 0 : index
    %308 = vector.load %arg19[%c0_103, %c0_104] : memref<128x32xf32, #tpu.memory_space<vmem>>, vector<128x32xf32>
    %cst_105 = arith.constant dense<0.000000e+00> : vector<8x32xf32>
    %309 = tpu.matmul %307, %308, %cst_105 {dimension_numbers = #tpu.dot_dimension_numbers<[1], [0], [0], [1], [0, 0, 1, 1], [], []>} : vector<8x128xf32>, vector<128x32xf32>, vector<8x32xf32> -> vector<8x32xf32>
    %c0_106 = arith.constant 0 : index
    %c0_107 = arith.constant 0 : index
    %310 = vector.load %arg20[%c0_106, %c0_107] : memref<1x32xf32, #tpu.memory_space<vmem>>, vector<1x32xf32>
    %311 = vector.broadcast %310 : vector<1x32xf32> to vector<8x32xf32>
    %312 = arith.addf %309, %311 : vector<8x32xf32>
    %313 = arith.addf %312, %300 : vector<8x32xf32>
    %c0_108 = arith.constant 0 : index
    %c0_109 = arith.constant 0 : index
    %314 = vector.load %arg21[%c0_108, %c0_109] : memref<1x32xf32, #tpu.memory_space<vmem>>, vector<1x32xf32>
    %c0_110 = arith.constant 0 : index
    %c0_111 = arith.constant 0 : index
    %315 = vector.load %arg22[%c0_110, %c0_111] : memref<1x32xf32, #tpu.memory_space<vmem>>, vector<1x32xf32>
    %cst_112 = arith.constant dense<0.000000e+00> : vector<8xf32>
    %316 = vector.multi_reduction <add>, %313, %cst_112 [1] : vector<8x32xf32> to vector<8xf32>
    %317 = vector.shape_cast %316 : vector<8xf32> to vector<8x1xf32>
    %cst_113 = arith.constant 3.200000e+01 : f32
    %318 = vector.broadcast %cst_113 : f32 to vector<8x1xf32>
    %319 = arith.divf %317, %318 : vector<8x1xf32>
    %320 = vector.broadcast %319 : vector<8x1xf32> to vector<8x32xf32>
    %321 = arith.subf %313, %320 : vector<8x32xf32>
    %322 = arith.mulf %321, %321 : vector<8x32xf32>
    %cst_114 = arith.constant dense<0.000000e+00> : vector<8xf32>
    %323 = vector.multi_reduction <add>, %322, %cst_114 [1] : vector<8x32xf32> to vector<8xf32>
    %324 = vector.shape_cast %323 : vector<8xf32> to vector<8x1xf32>
    %cst_115 = arith.constant 3.200000e+01 : f32
    %325 = vector.broadcast %cst_115 : f32 to vector<8x1xf32>
    %326 = arith.divf %324, %325 : vector<8x1xf32>
    %327 = vector.broadcast %319 : vector<8x1xf32> to vector<8x32xf32>
    %328 = arith.subf %313, %327 : vector<8x32xf32>
    %cst_116 = arith.constant 9.99999974E-6 : f32
    %329 = vector.broadcast %cst_116 : f32 to vector<8x1xf32>
    %330 = arith.addf %326, %329 : vector<8x1xf32>
    %331 = math.rsqrt %330 : vector<8x1xf32>
    %332 = vector.broadcast %331 : vector<8x1xf32> to vector<8x32xf32>
    %333 = arith.mulf %328, %332 : vector<8x32xf32>
    %334 = vector.broadcast %314 : vector<1x32xf32> to vector<8x32xf32>
    %335 = arith.mulf %333, %334 : vector<8x32xf32>
    %336 = vector.broadcast %315 : vector<1x32xf32> to vector<8x32xf32>
    %337 = arith.addf %335, %336 : vector<8x32xf32>
    %c0_117 = arith.constant 0 : index
    %c0_118 = arith.constant 0 : index
    %c0_119 = arith.constant 0 : index
    %338 = vector.load %arg23[%c0_117, %c0_118, %c0_119] : memref<1x8x32xf32, #tpu.memory_space<vmem>>, vector<1x8x32xf32>
    %339 = vector.shape_cast %338 : vector<1x8x32xf32> to vector<8x32xf32>
    %340 = vector.shape_cast %337 : vector<8x32xf32> to vector<1x8x32xf32>
    tpu.vector_store %arg23[%c0_117, %c0_118, %c0_119], %340 {strides = array<i32>} : memref<1x8x32xf32, #tpu.memory_space<vmem>>, vector<1x8x32xf32>,
    return
  }
  func.func @transform_0(%arg0: i32) -> (i32, i32) {
    %c0_i32 = arith.constant 0 : i32
    %c0_i32_0 = arith.constant 0 : i32
    return %arg0, %c0_i32 : i32, i32
  }
  func.func @transform_1(%arg0: i32) -> (i32, i32) {
    %c0_i32 = arith.constant 0 : i32
    %c0_i32_0 = arith.constant 0 : i32
    %c0_i32_1 = arith.constant 0 : i32
    return %c0_i32, %c0_i32_0 : i32, i32
  }
  func.func @transform_2(%arg0: i32) -> (i32, i32) {
    %c0_i32 = arith.constant 0 : i32
    %c0_i32_0 = arith.constant 0 : i32
    %c0_i32_1 = arith.constant 0 : i32
    return %c0_i32, %c0_i32_0 : i32, i32
  }
  func.func @transform_3(%arg0: i32) -> (i32, i32, i32) {
    %c0_i32 = arith.constant 0 : i32
    %c0_i32_0 = arith.constant 0 : i32
    %c0_i32_1 = arith.constant 0 : i32
    return %arg0, %c0_i32, %c0_i32_0 : i32, i32, i32
  }
  func.func @transform_4(%arg0: i32) -> (i32, i32) {
    %c0_i32 = arith.constant 0 : i32
    %c0_i32_0 = arith.constant 0 : i32
    %c0_i32_1 = arith.constant 0 : i32
    return %c0_i32, %c0_i32_0 : i32, i32
  }
  func.func @transform_5(%arg0: i32) -> (i32, i32) {
    %c0_i32 = arith.constant 0 : i32
    %c0_i32_0 = arith.constant 0 : i32
    %c0_i32_1 = arith.constant 0 : i32
    return %c0_i32, %c0_i32_0 : i32, i32
  }
  func.func @transform_6(%arg0: i32) -> (i32, i32) {
    %c0_i32 = arith.constant 0 : i32
    %c0_i32_0 = arith.constant 0 : i32
    %c0_i32_1 = arith.constant 0 : i32
    return %c0_i32, %c0_i32_0 : i32, i32
  }
  func.func @transform_7(%arg0: i32) -> (i32, i32) {
    %c0_i32 = arith.constant 0 : i32
    %c0_i32_0 = arith.constant 0 : i32
    %c0_i32_1 = arith.constant 0 : i32
    return %c0_i32, %c0_i32_0 : i32, i32
  }
  func.func @transform_8(%arg0: i32) -> (i32, i32) {
    %c0_i32 = arith.constant 0 : i32
    %c0_i32_0 = arith.constant 0 : i32
    %c0_i32_1 = arith.constant 0 : i32
    return %c0_i32, %c0_i32_0 : i32, i32
  }
  func.func @transform_9(%arg0: i32) -> (i32, i32) {
    %c0_i32 = arith.constant 0 : i32
    %c0_i32_0 = arith.constant 0 : i32
    %c0_i32_1 = arith.constant 0 : i32
    return %c0_i32, %c0_i32_0 : i32, i32
  }
  func.func @transform_10(%arg0: i32) -> (i32, i32) {
    %c0_i32 = arith.constant 0 : i32
    %c0_i32_0 = arith.constant 0 : i32
    %c0_i32_1 = arith.constant 0 : i32
    return %c0_i32, %c0_i32_0 : i32, i32
  }
  func.func @transform_11(%arg0: i32) -> (i32, i32) {
    %c0_i32 = arith.constant 0 : i32
    %c0_i32_0 = arith.constant 0 : i32
    %c0_i32_1 = arith.constant 0 : i32
    return %c0_i32, %c0_i32_0 : i32, i32
  }
  func.func @transform_12(%arg0: i32) -> (i32, i32) {
    %c0_i32 = arith.constant 0 : i32
    %c0_i32_0 = arith.constant 0 : i32
    %c0_i32_1 = arith.constant 0 : i32
    return %c0_i32, %c0_i32_0 : i32, i32
  }
  func.func @transform_13(%arg0: i32) -> (i32, i32) {
    %c0_i32 = arith.constant 0 : i32
    %c0_i32_0 = arith.constant 0 : i32
    %c0_i32_1 = arith.constant 0 : i32
    return %c0_i32, %c0_i32_0 : i32, i32
  }
  func.func @transform_14(%arg0: i32) -> (i32, i32) {
    %c0_i32 = arith.constant 0 : i32
    %c0_i32_0 = arith.constant 0 : i32
    %c0_i32_1 = arith.constant 0 : i32
    return %c0_i32, %c0_i32_0 : i32, i32
  }
  func.func @transform_15(%arg0: i32) -> (i32, i32) {
    %c0_i32 = arith.constant 0 : i32
    %c0_i32_0 = arith.constant 0 : i32
    %c0_i32_1 = arith.constant 0 : i32
    return %c0_i32, %c0_i32_0 : i32, i32
  }
  func.func @transform_16(%arg0: i32) -> (i32, i32) {
    %c0_i32 = arith.constant 0 : i32
    %c0_i32_0 = arith.constant 0 : i32
    %c0_i32_1 = arith.constant 0 : i32
    return %c0_i32, %c0_i32_0 : i32, i32
  }
  func.func @transform_17(%arg0: i32) -> (i32, i32) {
    %c0_i32 = arith.constant 0 : i32
    %c0_i32_0 = arith.constant 0 : i32
    %c0_i32_1 = arith.constant 0 : i32
    return %c0_i32, %c0_i32_0 : i32, i32
  }
  func.func @transform_18(%arg0: i32) -> (i32, i32) {
    %c0_i32 = arith.constant 0 : i32
    %c0_i32_0 = arith.constant 0 : i32
    %c0_i32_1 = arith.constant 0 : i32
    return %c0_i32, %c0_i32_0 : i32, i32
  }
  func.func @transform_19(%arg0: i32) -> (i32, i32) {
    %c0_i32 = arith.constant 0 : i32
    %c0_i32_0 = arith.constant 0 : i32
    %c0_i32_1 = arith.constant 0 : i32
    return %c0_i32, %c0_i32_0 : i32, i32
  }
  func.func @transform_20(%arg0: i32) -> (i32, i32) {
    %c0_i32 = arith.constant 0 : i32
    %c0_i32_0 = arith.constant 0 : i32
    %c0_i32_1 = arith.constant 0 : i32
    return %c0_i32, %c0_i32_0 : i32, i32
  }
  func.func @transform_21(%arg0: i32) -> (i32, i32) {
    %c0_i32 = arith.constant 0 : i32
    %c0_i32_0 = arith.constant 0 : i32
    %c0_i32_1 = arith.constant 0 : i32
    return %c0_i32, %c0_i32_0 : i32, i32
  }
  func.func @transform_22(%arg0: i32) -> (i32, i32, i32) {
    %c0_i32 = arith.constant 0 : i32
    %c0_i32_0 = arith.constant 0 : i32
    %c0_i32_1 = arith.constant 0 : i32
    return %arg0, %c0_i32, %c0_i32_0 : i32, i32, i32
  }
}

</mosaic_0001>

<bundles_post_ra>
// kernel: tpu_custom_call.1
= control target key start
LH: loop header
LB: loop body
LE: loop exit
PB: predicated region body
PF: predicated region fallthrough
CT: control target
= control target key end

     0   :  { %s5540_s0 = inlined_call_operand.vmem [shape: s32[16,1], index: 0, kind: input, shape index: {}]   ;;  %s5541_s1 = inlined_call_operand.vmem [shape: f32[50,32], index: 1, kind: input, shape index: {}]   ;;  %s5542_s2 = inlined_call_operand.vmem [shape: f32[8,32], index: 2, kind: input, shape index: {}]   ;;  %s5543_s3 = inlined_call_operand.vmem [shape: f32[2,8,32], index: 3, kind: input, shape index: {}]   ;;  %s5544_s4 = inlined_call_operand.vmem [shape: f32[8,8], index: 4, kind: input, shape index: {}]   ;;  %s5545_s5 = inlined_call_operand.vmem [shape: f32[32,128], index: 5, kind: input, shape index: {}]   ;;  %s5546_s6 = inlined_call_operand.vmem [shape: f32[32,32], index: 6, kind: input, shape index: {}]   ;;  %s5547_s7 = inlined_call_operand.vmem [shape: f32[1,32], index: 7, kind: input, shape index: {}]   ;;  %s5548_s8 = inlined_call_operand.vmem [shape: f32[1,32], index: 8, kind: input, shape index: {}]   ;;  %s5549_s9 = inlined_call_operand.vmem [shape: f32[1,32], index: 9, kind: input, shape index: {}]   ;;  %s5550_s10 = inlined_call_operand.vmem [shape: f32[32,32], index: 10, kind: input, shape index: {}]   ;;  %s5551_s11 = inlined_call_operand.vmem [shape: f32[32,32], index: 11, kind: input, shape index: {}]   ;;  %s5552_s12 = inlined_call_operand.vmem [shape: f32[32,32], index: 12, kind: input, shape index: {}]   ;;  %s5553_s13 = inlined_call_operand.vmem [shape: f32[1,32], index: 13, kind: input, shape index: {}]   ;;  %s5554_s14 = inlined_call_operand.vmem [shape: f32[1,32], index: 14, kind: input, shape index: {}]   ;;  %s5555_s15 = inlined_call_operand.vmem [shape: f32[1,32], index: 15, kind: input, shape index: {}]   ;;  %s5556_s16 = inlined_call_operand.vmem [shape: f32[32,128], index: 16, kind: input, shape index: {}]   ;;  %s5557_s17 = inlined_call_operand.vmem [shape: f32[1,128], index: 17, kind: input, shape index: {}]   ;;  %s5558_s18 = inlined_call_operand.vmem [shape: f32[128,32], index: 18, kind: input, shape index: {}]   ;;  %s5559_s19 = inlined_call_operand.vmem [shape: f32[1,32], index: 19, kind: input, shape index: {}]   ;;  %s5560_s20 = inlined_call_operand.vmem [shape: f32[1,32], index: 20, kind: input, shape index: {}]   ;;  %s5561_s21 = inlined_call_operand.vmem [shape: f32[1,32], index: 21, kind: input, shape index: {}]   ;;  %s5562_s22 = inlined_call_operand.hbm [shape: f32[2,8,32], index: 22, kind: output, shape index: {}]  }
   0x1   :  { %5585 = sst [smem:[#allocation10_spill]] %s5540_s0 }
   0x2   :  { %5586 = sst [smem:[#allocation11_spill]] %s5541_s1 }
   0x3   :  { %5587 = sst [smem:[#allocation12_spill]] %s5542_s2 }
   0x4   :  { %5588 = sst [smem:[#allocation13_spill]] %s5543_s3 }
   0x5   :  { %5589 = sst [smem:[#allocation14_spill]] %s5544_s4 }
   0x6   :  { %5590 = sst [smem:[#allocation15_spill]] %s5545_s5 }
   0x7   :  { %5591 = sst [smem:[#allocation16_spill]] %s5546_s6 }
   0x8   :  { %5592 = sst [smem:[#allocation17_spill]] %s5547_s7 }
   0x9   :  { %5593 = sst [smem:[#allocation18_spill]] %s5548_s8 }
   0xa   :  { %27 = vsyncpa [#allocation3], 0 }
   0xb   :  { %29 = vsyncpa [#allocation3 + $0x1], 0  ;;  %s4761_s3 = smov 0   ;;  %s4763_s28 = smov 0  }
   0xc   :  { %s4765_s29 = smov 0   ;;  %s4767_s30 = smov 0  }
   0xd LB: > { %5594 = sst [smem:[#allocation5_spill]] %s4619_s3  ;;  %s4782_s4 = sadd.s32 4294967295, %s4631_s30   ;;  %s4631_s30 = sphi %s4767_s30, %s5618_s30   ;;  %s4627_s29 = sphi %s4765_s29, %s5620_s29   ;;  %s4623_s28 = sphi %s4763_s28, %s5622_s28   ;;  %s4619_s3 = sphi %s4761_s3, %s5621_s3  }
   0xe   : > { %5595 = sst [smem:[#allocation6_spill]] %s4627_s29  ;;  %s3944_s0 = sadd.s32 4294967294, %s4631_s30  }
   0xf   : > { %s4786_s23 = sadd.s32 1, %s4631_s30   ;;  %s514_s1 = sadd.s32 1, %s4627_s29 }
  0x10   : > { %5596 = sst [smem:[#allocation7_spill]] %s4786_s23  ;;  %s511_s5 = ssub.s32 %s4631_s30, %s4786_s23 }
  0x11   : > { %p524_p0 = scmp.ne.s32.totalorder %s4627_s29, %s4623_s28  ;;  %p512_p1 = scmp.eq.s32.totalorder %s511_s5, 0 }
  0x12   : > { %p525_p2 = scmp.eq.s32.totalorder %s4782_s4, 1  ;;  %p530_p3 = scmp.ne.s32.totalorder %s4623_s28, %s4619_s3 }
  0x13   : > { %p531_p4 = scmp.eq.s32.totalorder %s3944_s0, 1  ;;  %p3947_p7 = scmp.ge.s32.totalorder %s4631_s30, 1 }
  0x14   : > { %s4797_s24 = scalar_select %p512_p1, %s4627_s29, %s514_s1  }
  0x15   : > { %p4799_p5 = por %p525_p2, %p524_p0  ;;  %p4803_p6 = por %p531_p4, %p530_p3 }
  0x16   : > { %5597 = sst [smem:[#allocation8_spill]] %s4797_s24  ;;  %p623_p8 = scmp.lt.s32.totalorder %s4631_s30, 3 }
  0x17   : > { %s5599_s25 = scalar_select %p4803_p6, 1, 0 }
  0x18   : > { %p624_p9 = pnand %p3947_p7, %p623_p8 }
  0x19   : > { %5600 = sst [smem:[#allocation9_spill]] %s5599_s25  ;;  %p688_p10 = scmp.lt.s32.totalorder (!%p624_p9), %s4782_s4, 1 }
  0x1a   : > { %627 = sbr.rel (%p624_p9) target bundleno = 6359 (0x18d7), region = 108  ;;  %s5601_s27 = sld [smem:[#allocation11_spill]] (!%p624_p9) }
  0x1b   : > { %s5602_s29 = sld [smem:[#allocation10_spill]] (!%p624_p9)  ;;  %s4639_s0 = smov (!%p624_p9), 96  }
  0x1c   : > { %s5603_s26 = sld [smem:[#allocation15_spill]] (!%p624_p9)  ;;  %s4640_s1 = smov (!%p624_p9), 64  }
  0x1d   : > { %s5605_s25 = sld [smem:[#allocation14_spill]] (!%p624_p9)  ;;  %s5576_s2 = smov (!%p624_p9), 16  }
  0x1e   : > { %s5578_s3 = smov (!%p624_p9), 24   ;;  %s5608_s7 = sld [smem:[#allocation17_spill]] (!%p624_p9) }
  0x1f   : > { %vm716_vm0 = vcmask 1041408   ;;  %v4633_v1 = vmov 0   ;;  %v4634_v2 = vmov 0.0   ;;  %s4818_s5 = scalar_select %p688_p10, %s4782_s4, 1  ;;  %vm4635_vm1 = vmmov 0  }
  0x20   : > { %v711_v0 = vld [vmem:[%s5601_s27 + $0x30] sm:$0x3]  ;;  %4512 = vset.pattern.permute.xlu0 %v4633_v1  ;;  %4155 = vmatprep.subr.mxu1 %v4634_v2  ;;  %v710_v3 = vld [vmem:[%s5601_s27 + $0x28] sm:$0xff]  ;;  %v709_v4 = vld [vmem:[%s5601_s27 + $0x20] sm:$0xff]  ;;  %v697_v10 = vlaneseq  ;;  %vm712_vm2 = vcmask 408576   ;;  %vm799_vm4 = vcmask 261120  }
  0x21   : > { %4156 = vmatpush3.msk.msra.mxu1 %vm716_vm0, %v711_v0  ;;  %4193 = vmatprep.subr.mxu0 %v4634_v2  ;;  %s3949_s24 = sshll.u32 %s4818_s5, 3  ;;  %v708_v5 = vld [vmem:[%s5601_s27 + $0x18] sm:$0xff]  ;;  %v707_v7 = vld [vmem:[%s5601_s27 + $0x10] sm:$0xff]  ;;  %v706_v8 = vld [vmem:[%s5601_s27 + $0x8] sm:$0xff]  ;;  %s5574_s5 = smov 104   ;;  %vm882_vm5 = vcmask 64512  }
  0x22   : > { %4157 = vmatprep.subr.mxu1 %v4634_v2  ;;  %4169 = vmatprep.mubr.msk.f32.mxu1 %vm4635_vm1, %v4634_v2  ;;  %s691_s23 = scalar_lea.vmem %s5602_s29, %s3949_s24  ;;  %v705_v9 = vld [vmem:[%s5601_s27] sm:$0xff]  ;;  %v698_v11 = vand.u32 127, %v697_v10  ;;  %v798_v13 = vld [vmem:[%s5603_s26 + $0x18] sm:$0xff]  ;;  %v797_v15 = vld [vmem:[%s5603_s26 + $0x10] sm:$0xff]  ;;  %s5580_s29 = smov 8   ;;  %vm1546_vm6 = vcmask 130048  }
  0x23   : > { %4158 = vmatpush3.msra.mxu1 %v710_v3  ;;  %4195 = vmatprep.mubr.msk.f32.mxu0 %vm4635_vm1, %v4634_v2  ;;  %v696_v6 = vld [vmem:[%s691_s23] sm:$0xff]  ;;  %s5604_s23 = sld [smem:[#allocation13_spill]]  ;;  %v796_v16 = vld [vmem:[%s5603_s26 + $0x8] sm:$0xff]  ;;  %vm1548_vm7 = vcmask 195584  }
  0x24   : > { %4159 = vmatprep.subr.mxu1 %v4634_v2  ;;  %700 = vperm.xlu0 %4512, %v696_v6   ;;  %v795_v17 = vld [vmem:[%s5603_s26] sm:$0xff]  ;;  %s5611_s8 = sld [smem:[#allocation18_spill]] }
  0x25   : > { %4160 = vmatpush3.msra.mxu1 %v709_v4  ;;  %v794_v30 = vld [vmem:[%s5605_s25] sm:$0xff]  ;;  %s5612_s25 = smov 120  }
  0x26   : > { %4161 = vmatprep.subr.mxu1 %v4634_v2 }
  0x27   : > { %4162 = vmatpush3.msra.mxu1 %v708_v5 }
  0x28   : > { %4163 = vmatprep.subr.mxu1 %v4634_v2 }
  0x29   : > { %4164 = vmatpush3.msra.mxu1 %v707_v7  ;;  %s695_s27 = scalar_lea.vmem %s5604_s23, %s3949_s24  ;;  %s5572_s24 = smov 112  }
  0x2a   : > { %4165 = vmatprep.subr.mxu1 %v4634_v2  ;;  %v4875_v18 = vld [vmem:[%s695_s27] sm:$0xff]  ;;  %s5582_s27 = smov 120  }
  0x2b   : > { %4166 = vmatpush3.msra.mxu1 %v706_v8 }
  0x2c   : > { %4167 = vmatprep.subr.mxu1 %v4634_v2 }
  0x2d   : > { %4168 = vmatpush3.msra.mxu1 %v705_v9 }
  0x2e   : > { %4172 = vmatprep.subr.mxu1 %v4634_v2 }
  0x9f   : > { %v701_v12 = vpop.permute.xlu0 %700 }
  0xa0   : > { %vm702_vm3 = vcmp.eq.s32.totalorder %v698_v11, %v701_v12 }
  0xa1   : > { %v3951_v14 = vsel %vm702_vm3, 1.0, %v4634_v2 }
  0xa2   : > { %4170 = vmatmul.mubr.msk.f32.vlgmr.msra.gmra.mxu1 %vm712_vm2, %v3951_v14 }
  0xa3   : > { %4173 = vmatpush3.msra.mxu1 %v798_v13  ;;  %4180 = vmatprep.mubr.msk.f32.mxu1 %vm4635_vm1, %v4634_v2 }
  0xa4   : > { %4174 = vmatprep.subr.mxu1 %v4634_v2 }
  0xa5   : > { %4175 = vmatpush3.msra.mxu1 %v797_v15 }
  0xa6   : > { %4176 = vmatprep.subr.mxu1 %v4634_v2 }
  0xa7   : > { %4177 = vmatpush3.msra.mxu1 %v796_v16 }
  0xa8   : > { %4178 = vmatprep.subr.mxu1 %v4634_v2 }
  0xa9   : > { %4179 = vmatpush3.msra.mxu1 %v795_v17 }
  0xaa   : > { %4181 = vmatmul.mubr.msk.f32.vlgmr.msra.gmra.mxu1 %vm799_vm4, %v4875_v18  ;;  %4183 = vmatprep.subr.mxu1 %v4634_v2 }
  0xab   : > { %4185 = vmatprep.mubr.msk.f32.mxu1 %vm4635_vm1, %v4634_v2 }
 0x162   : > { %v4883_v19 = vpop.f32.mrf.mxu1 }
 0x164   : > { %v4171_v20 = vpop.f32.mrf.mxu1 }
 0x16a   : > { %v4885_v21 = vpop.f32.mrf.mxu1 }
 0x16b   : > { %876 = vrot.lane.b32.xlu1 %v4885_v21, %s5572_s24  ;;  %874 = vrot.lane.b32.xlu0 %v4885_v21, %s5582_s27  ;;  %s5609_s24 = smov 104  }
 0x16c   : > { %v4182_v22 = vpop.f32.mrf.mxu1 }
 0x16f   : > { %878 = vrot.lane.b32.xlu1 %v4885_v21, %s5574_s5  ;;  %880 = vrot.lane.b32.xlu0 %v4885_v21, %s4639_s0 }
 0x1dd   : > { %v4894_v23 = vpop.permute.xlu1 %876  ;;  %v4896_v24 = vpop.permute.xlu0 %874 }
 0x1de   : > { %1033 = vrot.lane.b32.xlu0 %v4894_v23, %s4639_s0  ;;  %957 = vrot.lane.b32.xlu1 %v4896_v24, %s4639_s0 }
 0x1e1   : > { %v4900_v25 = vpop.permute.xlu1 %878  ;;  %v881_v26 = vpop.permute.xlu0 %880 }
 0x1e2   : > { %1109 = vrot.lane.b32.xlu1 %v4900_v25, %s4639_s0  ;;  %4184 = vmatpush3.xpose.msk.msra.mxu1 %vm882_vm5, %v881_v26  ;;  %s5606_s0 = sld [smem:[#allocation16_spill]] }
 0x1e3   : > { %4188 = vmatprep.subr.mxu1 %v4634_v2 }
 0x1e5   : > { %4186 = vmatmul.mubr.msk.f32.vlgmr.msra.gmra.mxu1 %vm882_vm5, %v4885_v21 }
 0x1e6   : > { %4190 = vmatprep.mubr.msk.f32.mxu1 %vm4635_vm1, %v4634_v2 }
 0x1e8   : > { %v1553_v26 = vld [vmem:[%s5606_s0 + $0x18] sm:$0xff] }
 0x250   : > { %v958_v27 = vpop.permute.xlu1 %957  ;;  %v1034_v28 = vpop.permute.xlu0 %1033 }
 0x251   : > { %4189 = vmatpush3.xpose.msk.msra.mxu1 %vm882_vm5, %v958_v27  ;;  %4194 = vmatpush3.xpose.msk.msra.mxu0 %vm882_vm5, %v1034_v28  ;;  %v1552_v27 = vld [vmem:[%s5606_s0 + $0x10] sm:$0xff] }
 0x252   : > { %4198 = vmatprep.subr.mxu1 %v4634_v2  ;;  %4203 = vmatprep.subr.mxu0 %v4634_v2 }
 0x254   : > { %v1110_v29 = vpop.permute.xlu1 %1109  ;;  %4191 = vmatmul.mubr.msk.f32.vlgmr.msra.gmra.mxu1 %vm882_vm5, %v4896_v24  ;;  %4196 = vmatmul.mubr.msk.f32.vlgmr.msra.gmra.mxu0 %vm882_vm5, %v4894_v23 }
 0x255   : > { %4199 = vmatpush3.xpose.msk.msra.mxu1 %vm882_vm5, %v1110_v29  ;;  %4200 = vmatprep.mubr.msk.f32.mxu1 %vm4635_vm1, %v4634_v2 }
 0x256   : > { %4205 = vmatprep.mubr.msk.f32.mxu0 %vm4635_vm1, %v4634_v2  ;;  %4208 = vmatprep.subr.mxu1 %v4634_v2 }
 0x258   : > { %4201 = vmatmul.mubr.msk.f32.vlgmr.msra.gmra.mxu1 %vm882_vm5, %v4900_v25 }
 0x259   : > { %4210 = vmatprep.mubr.msk.f32.mxu1 %vm4635_vm1, %v4634_v2 }
 0x2a5   : > { %v953_v31 = vpop.f32.mrf.mxu1 }
 0x2a6   : > { %v954_v32 = vadd.f32 %v953_v31, %v794_v30  ;;  %v1550_v31 = vld [vmem:[%s5606_s0] sm:$0xff] }
 0x2a7   : > { %v4187_v33 = vpop.f32.mrf.mxu1 }
 0x2a8   : > { %v1185_v34 = vsel %vm882_vm5, %v954_v32, -inf }
 0x2a9   : > { %1186 = vmax.xlane.f32.xlu0 %v1185_v34 }
 0x314   : > { %v1029_v35 = vpop.f32.mrf.mxu1  ;;  %v1105_v36 = vpop.f32.mrf.mxu0 }
 0x315   : > { %v1030_v37 = vadd.f32 %v1029_v35, %v794_v30  ;;  %v1106_v38 = vadd.f32 %v1105_v36, %v794_v30 }
 0x316   : > { %v4192_v39 = vpop.f32.mrf.mxu1  ;;  %v4197_v40 = vpop.f32.mrf.mxu0 }
 0x317   : > { %v1191_v41 = vsel %vm882_vm5, %v1106_v38, -inf  ;;  %v1188_v42 = vsel %vm882_vm5, %v1030_v37, -inf }
 0x318   : > { %1192 = vmax.xlane.f32.xlu0 %v1191_v41  ;;  %1189 = vmax.xlane.f32.xlu1 %v1188_v42  ;;  %v1181_v43 = vpop.f32.mrf.mxu1 }
 0x319   : > { %v1182_v44 = vadd.f32 %v1181_v43, %v794_v30  ;;  %v1551_v30 = vld [vmem:[%s5606_s0 + $0x8] sm:$0xff]  ;;  %v4986_v43 = vld [vmem:[%s5550_s10 + $0x18] sm:$0xff] }
 0x31a   : > { %v4202_v45 = vpop.f32.mrf.mxu1 }
 0x31b   : > { %v1194_v46 = vsel %vm882_vm5, %v1182_v44, -inf  ;;  %v4993_v45 = vld [vmem:[%s5550_s10 + $0x10] sm:$0xff] }
 0x31c   : > { %1195 = vmax.xlane.f32.xlu0 %v1194_v46  ;;  %v790_v46 = vmul.f32 5.656854, %v4883_v19 }
 0x329   : > { %1229 = vrot.lane.b32.xlu1 %v4885_v21, %s4640_s1 }
 0x332   : > { %v1187_v47 = vpop.xlane.xlu0 %1186 }
 0x333   : > { %v1197_v48 = vsub.f32 %v954_v32, %v1187_v47  ;;  %v5003_v47 = vld [vmem:[%s5550_s10 + $0x8] sm:$0xff] }
 0x335   : > { %v1201_v49 = vmul.f32 1.442695, %v1197_v48 }
 0x337   : > { %4513 = vpow2.f32 %v1201_v49  ;;  %v5013_v49 = vld [vmem:[%s5550_s10] sm:$0xff] }
 0x344   : > { %v4514_v50 = vpop.eup %4513 }
 0x345   : > { %v1209_v51 = vsel %vm882_vm5, %v4514_v50, 0.0 }
 0x34d   : > { %1210 = vadd.xlane.f32.xlu1 %v1209_v51 }
 0x3a1   : > { %v1193_v52 = vpop.xlane.xlu0 %1192  ;;  %v1190_v53 = vpop.xlane.xlu1 %1189 }
 0x3a2   : > { %v1199_v54 = vsub.f32 %v1106_v38, %v1193_v52  ;;  %v1198_v55 = vsub.f32 %v1030_v37, %v1190_v53 }
 0x3a4   : > { %v1205_v56 = vmul.f32 1.442695, %v1199_v54  ;;  %v1203_v57 = vmul.f32 1.442695, %v1198_v55 }
 0x3a5   : > { %v1230_v58 = vpop.permute.xlu1 %1229  ;;  %v1196_v59 = vpop.xlane.xlu0 %1195 }
 0x3a6   : > { %4515 = vpow2.f32 %v1205_v56  ;;  %v1200_v60 = vsub.f32 %v1182_v44, %v1196_v59  ;;  %4204 = vmatpush3.msra.mxu0 %v1230_v58 }
 0x3a7   : > { %4517 = vpow2.f32 %v1203_v57  ;;  %4213 = vmatprep.subr.mxu0 %v4634_v2 }
 0x3a8   : > { %v1207_v61 = vmul.f32 1.442695, %v1200_v60 }
 0x3aa   : > { %4519 = vpow2.f32 %v1207_v61 }
 0x3b3   : > { %v4516_v62 = vpop.eup %4515 }
 0x3b4   : > { %v4518_v63 = vpop.eup %4517  ;;  %v1215_v0 = vsel %vm882_vm5, %v4516_v62, 0.0 }
 0x3b5   : > { %1216 = vadd.xlane.f32.xlu1 %v1215_v0  ;;  %v1212_v1 = vsel %vm882_vm5, %v4518_v63, 0.0 }
 0x3b6   : > { %1213 = vadd.xlane.f32.xlu0 %v1212_v1 }
 0x3b7   : > { %v4520_v3 = vpop.eup %4519 }
 0x3b8   : > { %v1218_v4 = vsel %vm882_vm5, %v4520_v3, 0.0 }
 0x3ba   : > { %1219 = vadd.xlane.f32.xlu0 %v1218_v4 }
 0x3c6   : > { %1381 = vrot.lane.b32.xlu1 %v4894_v23, %s4640_s1 }
 0x3ca   : > { %1457 = vrot.lane.b32.xlu1 %v4900_v25, %s4640_s1 }
 0x3d0   : > { %1305 = vrot.lane.b32.xlu0 %v4896_v24, %s4640_s1  ;;  %s4644_s1 = smov 32  }
 0x3d6   : > { %v1211_v5 = vpop.xlane.xlu1 %1210 }
 0x3d7   : > { %4521 = vrcp.f32 %v1211_v5 }
 0x3e4   : > { %v4522_v6 = vpop.eup %4521 }
 0x3e5   : > { %v1225_v7 = vmul.f32 %v4522_v6, %v4514_v50  ;;  %v3967_v50 = vld [vmem:[%s5608_s7] ss:$0 sm:$0xff] }
 0x3e7   : > { %4206 = vmatmul.mubr.msk.f32.vlgmr.msra.gmra.mxu0 %vm882_vm5, %v1225_v7  ;;  %v3969_v7 = vld [vmem:[%s5611_s8] ss:$0 sm:$0xff] }
 0x3e8   : > { %4215 = vmatprep.mubr.msk.f32.mxu0 %vm4635_vm1, %v4634_v2 }
 0x43e   : > { %v1217_v8 = vpop.xlane.xlu1 %1216 }
 0x43f   : > { %4523 = vrcp.f32 %v1217_v8  ;;  %v1214_v9 = vpop.xlane.xlu0 %1213 }
 0x440   : > { %4525 = vrcp.f32 %v1214_v9  ;;  %v3970_v9 = vld [vmem:[%s5549_s9] ss:$0 sm:$0xff] }
 0x442   : > { %v1382_v10 = vpop.permute.xlu1 %1381 }
 0x443   : > { %v1220_v11 = vpop.xlane.xlu0 %1219  ;;  %4214 = vmatpush3.msra.mxu0 %v1382_v10 }
 0x444   : > { %4527 = vrcp.f32 %v1220_v11  ;;  %4223 = vmatprep.subr.mxu0 %v4634_v2 }
 0x446   : > { %v1458_v17 = vpop.permute.xlu1 %1457 }
 0x447   : > { %v1306_v12 = vpop.permute.xlu0 %1305 }
 0x448   : > { %4209 = vmatpush3.msra.mxu1 %v1306_v12 }
 0x449   : > { %4218 = vmatprep.subr.mxu1 %v4634_v2 }
 0x44c   : > { %v4524_v13 = vpop.eup %4523 }
 0x44d   : > { %v4526_v14 = vpop.eup %4525  ;;  %v1227_v15 = vmul.f32 %v4524_v13, %v4516_v62  ;;  %v1666_v62 = vld [vmem:[%s5551_s11 + $0x8] sm:$0xff] }
 0x44e   : > { %v1226_v16 = vmul.f32 %v4526_v14, %v4518_v63 }
 0x44f   : > { %4216 = vmatmul.mubr.msk.f32.vlgmr.msra.gmra.mxu0 %vm882_vm5, %v1227_v15 }
 0x450   : > { %4211 = vmatmul.mubr.msk.f32.vlgmr.msra.gmra.mxu1 %vm882_vm5, %v1226_v16  ;;  %4231 = vmatprep.mubr.msk.f32.mxu0 %vm4635_vm1, %v4634_v2 }
 0x451   : > { %v4528_v20 = vpop.eup %4527  ;;  %4219 = vmatpush3.msra.mxu1 %v1458_v17  ;;  %4220 = vmatprep.mubr.msk.f32.mxu1 %vm4635_vm1, %v4634_v2 }
 0x452   : > { %v1228_v22 = vmul.f32 %v4528_v20, %v4520_v3  ;;  %4234 = vmatprep.subr.mxu1 %v4634_v2  ;;  %4224 = vmatpush3.msra.mxu0 %v1553_v26 }
 0x453   : > { %4225 = vmatprep.subr.mxu0 %v4634_v2 }
 0x454   : > { %4221 = vmatmul.mubr.msk.f32.vlgmr.msra.gmra.mxu1 %vm882_vm5, %v1228_v22  ;;  %4226 = vmatpush3.msra.mxu0 %v1552_v27 }
 0x455   : > { %4242 = vmatprep.mubr.msk.f32.mxu1 %vm4635_vm1, %v4634_v2  ;;  %4227 = vmatprep.subr.mxu0 %v4634_v2 }
 0x456   : > { %4228 = vmatpush3.msra.mxu0 %v1551_v30 }
 0x457   : > { %4229 = vmatprep.subr.mxu0 %v4634_v2 }
 0x458   : > { %4230 = vmatpush3.msra.mxu0 %v1550_v31 }
 0x459   : > { %4245 = vmatprep.subr.mxu0 %v4634_v2 }
 0x4a7   : > { %v1301_v28 = vpop.f32.mrf.mxu0 }
 0x4a9   : > { %v4207_v29 = vpop.f32.mrf.mxu0 }
 0x50f   : > { %v1453_v32 = vpop.f32.mrf.mxu0 }
 0x510   : > { %v1377_v33 = vpop.f32.mrf.mxu1  ;;  %1538 = vrot.lane.b32.xlu1 %v1453_v32, %s5576_s2  ;;  %s5613_s2 = smov 8  }
 0x511   : > { %1534 = vrot.lane.b32.xlu0 %v1377_v33, %s5580_s29  ;;  %v4217_v34 = vpop.f32.mrf.mxu0  ;;  %s5615_s29 = smov 16  }
 0x512   : > { %v4212_v35 = vpop.f32.mrf.mxu1 }
 0x514   : > { %v1529_v36 = vpop.f32.mrf.mxu1 }
 0x515   : > { %1542 = vrot.lane.b32.xlu0 %v1529_v36, %s5578_s3  ;;  %s5607_s3 = sld [smem:[#allocation12_spill]] }
 0x516   : > { %v4222_v37 = vpop.f32.mrf.mxu1 }
 0x51b   : > { %v791_v48 = vld [vmem:[%s5607_s3] sm:$0xff]  ;;  %s5614_s3 = smov 24  }
 0x51c   : > { %v792_v19 = vadd.f32 %v791_v48, %v790_v46 }
 0x582   : > { %v1539_v39 = vpop.permute.xlu1 %1538 }
 0x583   : > { %v1535_v38 = vpop.permute.xlu0 %1534 }
 0x584   : > { %v1545_v40 = vsel %vm882_vm5, %v1301_v28, %v1535_v38 }
 0x585   : > { %v1547_v41 = vsel %vm1546_vm6, %v1545_v40, %v1539_v39 }
 0x587   : > { %v1543_v42 = vpop.permute.xlu0 %1542 }
 0x588   : > { %v1549_v44 = vsel %vm1548_vm7, %v1547_v41, %v1543_v42 }
 0x589   : > { %4232 = vmatmul.mubr.msk.f32.vlgmr.msra.gmra.mxu0 %vm799_vm4, %v1549_v44 }
 0x58a   : > { %4246 = vmatpush3.msra.mxu0 %v4986_v43  ;;  %4253 = vmatprep.mubr.msk.f32.mxu0 %vm4635_vm1, %v4634_v2 }
 0x58b   : > { %4247 = vmatprep.subr.mxu0 %v4634_v2 }
 0x58c   : > { %4248 = vmatpush3.msra.mxu0 %v4993_v45 }
 0x58d   : > { %4249 = vmatprep.subr.mxu0 %v4634_v2 }
 0x58e   : > { %4250 = vmatpush3.msra.mxu0 %v5003_v47 }
 0x58f   : > { %4251 = vmatprep.subr.mxu0 %v4634_v2 }
 0x590   : > { %4252 = vmatpush3.msra.mxu0 %v5013_v49 }
 0x591   : > { %4254 = vmatmul.mubr.msk.f32.vlgmr.msra.gmra.mxu0 %vm799_vm4, %v792_v19  ;;  %4266 = vmatprep.subr.mxu0 %v4634_v2 }
 0x592   : > { %4268 = vmatprep.mubr.msk.f32.mxu0 %vm4635_vm1, %v4634_v2 }
 0x649   : > { %v1630_v51 = vpop.f32.mrf.mxu0 }
 0x64a   : > { %v1631_v52 = vadd.f32 %v3967_v50, %v1630_v51 }
 0x64b   : > { %v4233_v53 = vpop.f32.mrf.mxu0 }
 0x64c   : > { %v1634_v54 = vadd.f32 %v1631_v52, %v4875_v18 }
 0x64e   : > { %v1637_v55 = vsel %vm799_vm4, %v1634_v54, 0.0 }
 0x64f   : > { %1638 = vadd.xlane.f32.xlu1 %v1637_v55 }
 0x651   : > { %v1815_v56 = vpop.f32.mrf.mxu0 }
 0x653   : > { %v4255_v57 = vpop.f32.mrf.mxu0 }
 0x660   : > { %1912 = vrot.lane.b32.xlu1 %v4896_v24, %s4644_s1  ;;  %v1668_v24 = vld [vmem:[%s5551_s11 + $0x18] sm:$0xff] }
 0x661   : > { %4235 = vmatpush3.msra.mxu1 %v1668_v24 }
 0x662   : > { %4236 = vmatprep.subr.mxu1 %v4634_v2 }
 0x664   : > { %1820 = vrot.lane.b32.xlu1 %v1815_v56, %s5582_s27  ;;  %s5610_s27 = smov 112  }
 0x668   : > { %2064 = vrot.lane.b32.xlu1 %v4900_v25, %s4644_s1  ;;  %v1667_v25 = vld [vmem:[%s5551_s11 + $0x10] sm:$0xff] }
 0x669   : > { %4237 = vmatpush3.msra.mxu1 %v1667_v25 }
 0x66a   : > { %4238 = vmatprep.subr.mxu1 %v4634_v2 }
 0x66b   : > { %4239 = vmatpush3.msra.mxu1 %v1666_v62 }
 0x66c   : > { %1824 = vrot.lane.b32.xlu1 %v1815_v56, %s5609_s24  ;;  %4240 = vmatprep.subr.mxu1 %v4634_v2 }
 0x6d8   : > { %v1639_v58 = vpop.xlane.xlu1 %1638 }
 0x6d9   : > { %v1641_v59 = vmul.f32 0.03125, %v1639_v58 }
 0x6db   : > { %v1642_v60 = vsub.f32 %v1634_v54, %v1641_v59 }
 0x6dc   : > { %v5061_v6 = vpop.permute.xlu1 %1912 }
 0x6dd   : > { %v1643_v61 = vmul.f32 %v1642_v60, %v1642_v60 }
 0x6df   : > { %v1644_v18 = vsel %vm799_vm4, %v1643_v61, 0.0 }
 0x6e0   : > { %1645 = vadd.xlane.f32.xlu0 %v1644_v18  ;;  %v1821_v12 = vpop.permute.xlu1 %1820 }
 0x6e4   : > { %v5079_v13 = vpop.permute.xlu1 %2064 }
 0x6e8   : > { %v1825_v14 = vpop.permute.xlu1 %1824 }
 0x6f6   : > { %1836 = vrot.lane.b32.xlu0 %v4885_v21, %s4644_s1  ;;  %v1665_v21 = vld [vmem:[%s5551_s11] sm:$0xff] }
 0x6f7   : > { %4241 = vmatpush3.msra.mxu1 %v1665_v21 }
 0x6f8   : > { %4256 = vmatprep.subr.mxu1 %v4634_v2 }
 0x6fa   : > { %1988 = vrot.lane.b32.xlu0 %v4894_v23, %s4644_s1 }
 0x6fe   : > { %1822 = vrot.lane.b32.xlu0 %v1815_v56, %s5610_s27 }
 0x769   : > { %v1646_v23 = vpop.xlane.xlu0 %1645 }
 0x76a   : > { %v1647_v63 = vmul.f32 0.03125, %v1646_v23 }
 0x76c   : > { %v1648_v0 = vadd.f32 1e-05, %v1647_v63 }
 0x76d   : > { %v5051_v1 = vpop.permute.xlu0 %1836 }
 0x76e   : > { %4529 = vrsqrt.f32 %v1648_v0 }
 0x771   : > { %v5053_v3 = vpop.permute.xlu0 %1988 }
 0x772   : > { %4267 = vmatpush3.xpose.msk.msra.mxu0 %vm882_vm5, %v5053_v3 }
 0x773   : > { %4276 = vmatprep.subr.mxu0 %v4634_v2 }
 0x775   : > { %v1823_v4 = vpop.permute.xlu0 %1822 }
 0x776   : > { %4269 = vmatmul.mubr.msk.f32.vlgmr.msra.gmra.mxu0 %vm882_vm5, %v1823_v4 }
 0x777   : > { %4278 = vmatprep.mubr.msk.f32.mxu0 %vm4635_vm1, %v4634_v2 }
 0x77b   : > { %v4530_v5 = vpop.eup %4529 }
 0x77c   : > { %v1650_v8 = vmul.f32 %v4530_v5, %v1642_v60 }
 0x77e   : > { %v1657_v10 = vmul.f32 %v3969_v7, %v1650_v8 }
 0x780   : > { %v5069_v11 = vadd.f32 %v3970_v9, %v1657_v10  ;;  %v5141_v10 = vld [vmem:[%s5552_s12 + $0x18] sm:$0xff] }
 0x782   : > { %4243 = vmatmul.mubr.msk.f32.vlgmr.msra.gmra.mxu1 %vm799_vm4, %v5069_v11 }
 0x783   : > { %4257 = vmatpush3.xpose.msk.msra.mxu1 %vm882_vm5, %v5051_v1  ;;  %4258 = vmatprep.mubr.msk.f32.mxu1 %vm4635_vm1, %v4634_v2 }
 0x784   : > { %4261 = vmatprep.subr.mxu1 %v4634_v2 }
 0x786   : > { %4259 = vmatmul.mubr.msk.f32.vlgmr.msra.gmra.mxu1 %vm882_vm5, %v1815_v56 }
 0x787   : > { %4262 = vmatpush3.xpose.msk.msra.mxu1 %vm882_vm5, %v5061_v6  ;;  %4263 = vmatprep.mubr.msk.f32.mxu1 %vm4635_vm1, %v4634_v2 }
 0x788   : > { %4271 = vmatprep.subr.mxu1 %v4634_v2 }
 0x78a   : > { %4264 = vmatmul.mubr.msk.f32.vlgmr.msra.gmra.mxu1 %vm882_vm5, %v1821_v12  ;;  %v5146_v12 = vld [vmem:[%s5552_s12 + $0x10] sm:$0xff] }
 0x78b   : > { %4272 = vmatpush3.xpose.msk.msra.mxu1 %vm882_vm5, %v5079_v13  ;;  %4273 = vmatprep.mubr.msk.f32.mxu1 %vm4635_vm1, %v4634_v2 }
 0x78c   : > { %4281 = vmatprep.subr.mxu1 %v4634_v2 }
 0x78e   : > { %4274 = vmatmul.mubr.msk.f32.vlgmr.msra.gmra.mxu1 %vm882_vm5, %v1825_v14  ;;  %v5153_v14 = vld [vmem:[%s5552_s12 + $0x8] sm:$0xff] }
 0x78f   : > { %4283 = vmatprep.mubr.msk.f32.mxu1 %vm4635_vm1, %v4634_v2 }
 0x836   : > { %v2060_v15 = vpop.f32.mrf.mxu0 }
 0x837   : > { %v2146_v29 = vsel %vm882_vm5, %v2060_v15, -inf }
 0x838   : > { %v4270_v16 = vpop.f32.mrf.mxu0 }
 0x842   : > { %v5095_v17 = vpop.f32.mrf.mxu1 }
 0x843   : > { %4277 = vmatpush3.msra.mxu0 %v5095_v17 }
 0x844   : > { %v4244_v20 = vpop.f32.mrf.mxu1  ;;  %4286 = vmatprep.subr.mxu0 %v4634_v2 }
 0x845   : > { %v5163_v20 = vld [vmem:[%s5552_s12] sm:$0xff] }
 0x846   : > { %v1908_v22 = vpop.f32.mrf.mxu1 }
 0x847   : > { %v2140_v26 = vsel %vm882_vm5, %v1908_v22, -inf }
 0x848   : > { %2141 = vmax.xlane.f32.xlu0 %v2140_v26  ;;  %v4260_v27 = vpop.f32.mrf.mxu1 }
 0x84a   : > { %v1984_v28 = vpop.f32.mrf.mxu1 }
 0x84b   : > { %v2143_v30 = vsel %vm882_vm5, %v1984_v28, -inf }
 0x84c   : > { %2147 = vmax.xlane.f32.xlu0 %v2146_v29  ;;  %2144 = vmax.xlane.f32.xlu1 %v2143_v30  ;;  %v4265_v31 = vpop.f32.mrf.mxu1 }
 0x84e   : > { %v2136_v32 = vpop.f32.mrf.mxu1 }
 0x84f   : > { %v2149_v33 = vsel %vm882_vm5, %v2136_v32, -inf }
 0x850   : > { %2150 = vmax.xlane.f32.xlu0 %v2149_v33  ;;  %v4275_v34 = vpop.f32.mrf.mxu1 }
 0x8d1   : > { %v2142_v35 = vpop.xlane.xlu0 %2141 }
 0x8d2   : > { %v2152_v54 = vsub.f32 %v1908_v22, %v2142_v35  ;;  %v5177_v35 = vld [vmem:[%s5553_s13] ss:$0 sm:$0xff] }
 0x8d4   : > { %v2156_v55 = vmul.f32 1.442695, %v2152_v54  ;;  %v5222_v54 = vld [vmem:[%s5558_s18 + $0x70] sm:$0xff] }
 0x8d5   : > { %v2148_v36 = vpop.xlane.xlu0 %2147  ;;  %v2145_v37 = vpop.xlane.xlu1 %2144 }
 0x8d6   : > { %v2154_v38 = vsub.f32 %v2060_v15, %v2148_v36  ;;  %v2153_v39 = vsub.f32 %v1984_v28, %v2145_v37 }
 0x8d8   : > { %v2160_v40 = vmul.f32 1.442695, %v2154_v38  ;;  %v2158_v41 = vmul.f32 1.442695, %v2153_v39 }
 0x8d9   : > { %v2151_v42 = vpop.xlane.xlu0 %2150 }
 0x8da   : > { %4531 = vpow2.f32 %v2160_v40  ;;  %v2155_v44 = vsub.f32 %v2136_v32, %v2151_v42 }
 0x8db   : > { %4533 = vpow2.f32 %v2158_v41 }
 0x8dc   : > { %v2162_v46 = vmul.f32 1.442695, %v2155_v44 }
 0x8de   : > { %4535 = vpow2.f32 %v2162_v46 }
 0x8df   : > { %4537 = vpow2.f32 %v2156_v55  ;;  %v5230_v55 = vld [vmem:[%s5558_s18 + $0x68] sm:$0xff] }
 0x8e7   : > { %v4532_v48 = vpop.eup %4531 }
 0x8e8   : > { %v4534_v19 = vpop.eup %4533  ;;  %v2170_v50 = vsel %vm882_vm5, %v4532_v48, 0.0 }
 0x8e9   : > { %2171 = vadd.xlane.f32.xlu1 %v2170_v50  ;;  %v2167_v51 = vsel %vm882_vm5, %v4534_v19, 0.0  ;;  %v5196_v50 = vld [vmem:[%s5556_s16 + $0x10] sm:$0xff] }
 0x8ea   : > { %2168 = vadd.xlane.f32.xlu0 %v2167_v51  ;;  %v5202_v51 = vld [vmem:[%s5556_s16 + $0x8] sm:$0xff] }
 0x8eb   : > { %v4536_v52 = vpop.eup %4535 }
 0x8ec   : > { %v2173_v53 = vsel %vm882_vm5, %v4536_v52, 0.0  ;;  %v4538_v56 = vpop.eup %4537 }
 0x8ed   : > { %v2164_v57 = vsel %vm882_vm5, %v4538_v56, 0.0 }
 0x8ee   : > { %2174 = vadd.xlane.f32.xlu0 %v2173_v53  ;;  %v5217_v53 = vld [vmem:[%s5558_s18 + $0x78] sm:$0xff] }
 0x8fa   : > { %1827 = vrot.lane.b32.xlu1 %v5095_v17, %s5612_s25 }
 0x904   : > { %1830 = vrot.lane.b32.xlu0 %v5095_v17, %s5610_s27 }
 0x91e   : > { %2165 = vadd.xlane.f32.xlu1 %v2164_v57  ;;  %v5244_v57 = vld [vmem:[%s5558_s18 + $0x58] sm:$0xff] }
 0x92f   : > { %1833 = vrot.lane.b32.xlu1 %v5095_v17, %s5609_s24 }
 0x972   : > { %v2172_v58 = vpop.xlane.xlu1 %2171 }
 0x973   : > { %v2169_v59 = vpop.xlane.xlu0 %2168 }
 0x974   : > { %4539 = vrcp.f32 %v2169_v59  ;;  %v5258_v59 = vld [vmem:[%s5558_s18 + $0x48] sm:$0xff] }
 0x976   : > { %v5113_v60 = vpop.permute.xlu1 %1827 }
 0x977   : > { %4282 = vmatpush3.msra.mxu1 %v5113_v60  ;;  %v2175_v24 = vpop.xlane.xlu0 %2174 }
 0x978   : > { %4291 = vmatprep.subr.mxu1 %v4634_v2  ;;  %4541 = vrcp.f32 %v2175_v24  ;;  %v5279_v24 = vld [vmem:[%s5558_s18 + $0x30] sm:$0xff] }
 0x97b   : > { %v5127_v5 = vpop.permute.xlu0 %1830 }
 0x981   : > { %v4540_v61 = vpop.eup %4539 }
 0x982   : > { %v2181_v18 = vmul.f32 %v4540_v61, %v4534_v19  ;;  %v5190_v19 = vld [vmem:[%s5556_s16 + $0x18] sm:$0xff]  ;;  %v5265_v61 = vld [vmem:[%s5558_s18 + $0x40] sm:$0xff] }
 0x984   : > { %4284 = vmatmul.mubr.msk.f32.vlgmr.msra.gmra.mxu1 %vm882_vm5, %v2181_v18  ;;  %v5272_v18 = vld [vmem:[%s5558_s18 + $0x38] sm:$0xff] }
 0x985   : > { %4293 = vmatprep.mubr.msk.f32.mxu1 %vm4635_vm1, %v4634_v2  ;;  %v4542_v62 = vpop.eup %4541 }
 0x986   : > { %v2183_v23 = vmul.f32 %v4542_v62, %v4536_v52  ;;  %v5209_v52 = vld [vmem:[%s5556_s16] sm:$0xff] }
 0x987   : > { %v5293_v62 = vld [vmem:[%s5558_s18 + $0x20] sm:$0xff] }
 0x9a7   : > { %v2166_v25 = vpop.xlane.xlu1 %2165 }
 0x9a8   : > { %4543 = vrcp.f32 %v2166_v25  ;;  %v5286_v25 = vld [vmem:[%s5558_s18 + $0x28] sm:$0xff] }
 0x9a9   : > { %4545 = vrcp.f32 %v2172_v58  ;;  %v5251_v58 = vld [vmem:[%s5558_s18 + $0x50] sm:$0xff] }
 0x9ab   : > { %v5120_v21 = vpop.permute.xlu1 %1833 }
 0x9ac   : > { %4292 = vmatpush3.msra.mxu1 %v5120_v21 }
 0x9ad   : > { %4294 = vmatmul.mubr.msk.f32.vlgmr.msra.gmra.mxu1 %vm882_vm5, %v2183_v23  ;;  %4307 = vmatprep.subr.mxu1 %v4634_v2  ;;  %v5300_v23 = vld [vmem:[%s5558_s18 + $0x18] sm:$0xff] }
 0x9ae   : > { %4315 = vmatprep.mubr.msk.f32.mxu1 %vm4635_vm1, %v4634_v2  ;;  %4308 = vmatpush3.msra.mxu1 %v5190_v19 }
 0x9af   : > { %4309 = vmatprep.subr.mxu1 %v4634_v2 }
 0x9b0   : > { %4310 = vmatpush3.msra.mxu1 %v5196_v50 }
 0x9b1   : > { %4311 = vmatprep.subr.mxu1 %v4634_v2 }
 0x9b2   : > { %4312 = vmatpush3.msra.mxu1 %v5202_v51 }
 0x9b3   : > { %4313 = vmatprep.subr.mxu1 %v4634_v2 }
 0x9b4   : > { %4314 = vmatpush3.msra.mxu1 %v5209_v52 }
 0x9b5   : > { %v4544_v63 = vpop.eup %4543  ;;  %4353 = vmatprep.subr.mxu1 %v4634_v2 }
 0x9b6   : > { %v2180_v0 = vmul.f32 %v4544_v63, %v4538_v56  ;;  %v4546_v4 = vpop.eup %4545  ;;  %v5237_v56 = vld [vmem:[%s5558_s18 + $0x60] sm:$0xff]  ;;  %v5307_v63 = vld [vmem:[%s5558_s18 + $0x10] sm:$0xff] }
 0x9b7   : > { %v2182_v7 = vmul.f32 %v4546_v4, %v4532_v48 }
 0x9b8   : > { %4279 = vmatmul.mubr.msk.f32.vlgmr.msra.gmra.mxu0 %vm882_vm5, %v2180_v0 }
 0x9b9   : > { %4287 = vmatpush3.msra.mxu0 %v5127_v5  ;;  %4288 = vmatprep.mubr.msk.f32.mxu0 %vm4635_vm1, %v4634_v2 }
 0x9ba   : > { %4296 = vmatprep.subr.mxu0 %v4634_v2 }
 0x9bc   : > { %4289 = vmatmul.mubr.msk.f32.vlgmr.msra.gmra.mxu0 %vm882_vm5, %v2182_v7 }
 0x9bd   : > { %4304 = vmatprep.mubr.msk.f32.mxu0 %vm4635_vm1, %v4634_v2  ;;  %4297 = vmatpush3.msra.mxu0 %v5141_v10 }
 0x9be   : > { %4298 = vmatprep.subr.mxu0 %v4634_v2 }
 0x9bf   : > { %4299 = vmatpush3.msra.mxu0 %v5146_v12 }
 0x9c0   : > { %4300 = vmatprep.subr.mxu0 %v4634_v2 }
 0x9c1   : > { %4301 = vmatpush3.msra.mxu0 %v5153_v14 }
 0x9c2   : > { %4302 = vmatprep.subr.mxu0 %v4634_v2 }
 0x9c3   : > { %4303 = vmatpush3.msra.mxu0 %v5163_v20 }
 0x9c4   : > { %4318 = vmatprep.subr.mxu0 %v4634_v2 }
 0xa44   : > { %v2326_v8 = vpop.f32.mrf.mxu1 }
 0xa45   : > { %2477 = vrot.lane.b32.xlu1 %v2326_v8, %s5613_s2 }
 0xa46   : > { %v4285_v9 = vpop.f32.mrf.mxu1 }
 0xa47   : > { %v5316_v9 = vld [vmem:[%s5554_s14] ss:$0 sm:$0xff] }
 0xa6d   : > { %v2472_v15 = vpop.f32.mrf.mxu1 }
 0xa6e   : > { %2485 = vrot.lane.b32.xlu1 %v2472_v15, %s5614_s3 }
 0xa6f   : > { %v4295_v16 = vpop.f32.mrf.mxu1 }
 0xa70   : > { %v5322_v16 = vld [vmem:[%s5555_s15] ss:$0 sm:$0xff] }
 0xa78   : > { %v2253_v22 = vpop.f32.mrf.mxu0 }
 0xa7a   : > { %v4280_v26 = vpop.f32.mrf.mxu0 }
 0xa7c   : > { %v2399_v27 = vpop.f32.mrf.mxu0 }
 0xa7d   : > { %2481 = vrot.lane.b32.xlu0 %v2399_v27, %s5615_s29 }
 0xa7e   : > { %v4290_v28 = vpop.f32.mrf.mxu0 }
 0xab7   : > { %v2478_v29 = vpop.permute.xlu1 %2477 }
 0xab8   : > { %v2488_v30 = vsel %vm882_vm5, %v2253_v22, %v2478_v29 }
 0xae0   : > { %v2486_v32 = vpop.permute.xlu1 %2485 }
 0xaef   : > { %v2482_v31 = vpop.permute.xlu0 %2481 }
 0xaf0   : > { %v2489_v33 = vsel %vm1546_vm6, %v2488_v30, %v2482_v31  ;;  %v5364_v30 = vld [vmem:[%s5559_s19] ss:$0 sm:$0xff] }
 0xaf1   : > { %v2490_v34 = vsel %vm1548_vm7, %v2489_v33, %v2486_v32 }
 0xaf2   : > { %4305 = vmatmul.mubr.msk.f32.vlgmr.msra.gmra.mxu0 %vm799_vm4, %v2490_v34 }
 0xaf3   : > { %4350 = vmatprep.mubr.msk.f32.mxu0 %vm4635_vm1, %v4634_v2  ;;  %4319 = vmatpush3.msra.mxu0 %v5217_v53 }
 0xaf4   : > { %4320 = vmatprep.subr.mxu0 %v4634_v2 }
 0xaf5   : > { %4321 = vmatpush3.msra.mxu0 %v5222_v54 }
 0xaf6   : > { %4322 = vmatprep.subr.mxu0 %v4634_v2 }
 0xaf7   : > { %4323 = vmatpush3.msra.mxu0 %v5230_v55 }
 0xaf8   : > { %4324 = vmatprep.subr.mxu0 %v4634_v2 }
 0xaf9   : > { %4325 = vmatpush3.msra.mxu0 %v5237_v56 }
 0xafa   : > { %4326 = vmatprep.subr.mxu0 %v4634_v2 }
 0xafb   : > { %4327 = vmatpush3.msra.mxu0 %v5244_v57 }
 0xafc   : > { %4328 = vmatprep.subr.mxu0 %v4634_v2 }
 0xafd   : > { %4329 = vmatpush3.msra.mxu0 %v5251_v58 }
 0xafe   : > { %4330 = vmatprep.subr.mxu0 %v4634_v2 }
 0xaff   : > { %4331 = vmatpush3.msra.mxu0 %v5258_v59 }
 0xb00   : > { %4332 = vmatprep.subr.mxu0 %v4634_v2 }
 0xb01   : > { %4333 = vmatpush3.msra.mxu0 %v5265_v61 }
 0xb02   : > { %4334 = vmatprep.subr.mxu0 %v4634_v2 }
 0xb03   : > { %4335 = vmatpush3.msra.mxu0 %v5272_v18 }
 0xb04   : > { %4336 = vmatprep.subr.mxu0 %v4634_v2 }
 0xb05   : > { %4337 = vmatpush3.msra.mxu0 %v5279_v24 }
 0xb06   : > { %4338 = vmatprep.subr.mxu0 %v4634_v2 }
 0xb07   : > { %4339 = vmatpush3.msra.mxu0 %v5286_v25 }
 0xb08   : > { %4340 = vmatprep.subr.mxu0 %v4634_v2 }
 0xb09   : > { %4341 = vmatpush3.msra.mxu0 %v5293_v62 }
 0xb0a   : > { %4342 = vmatprep.subr.mxu0 %v4634_v2 }
 0xb0b   : > { %4343 = vmatpush3.msra.mxu0 %v5300_v23 }
 0xb0c   : > { %4344 = vmatprep.subr.mxu0 %v4634_v2 }
 0xb0d   : > { %4345 = vmatpush3.msra.mxu0 %v5307_v63 }
 0xb0e   : > { %4346 = vmatprep.subr.mxu0 %v4634_v2 }
 0xbb2   : > { %v2571_v36 = vpop.f32.mrf.mxu0 }
 0xbb3   : > { %v2572_v37 = vadd.f32 %v5177_v35, %v2571_v36 }
 0xbb4   : > { %v4306_v38 = vpop.f32.mrf.mxu0 }
 0xbb5   : > { %v2575_v39 = vadd.f32 %v2572_v37, %v5069_v11 }
 0xbb7   : > { %v2578_v40 = vsel %vm799_vm4, %v2575_v39, 0.0 }
 0xbb8   : > { %2579 = vadd.xlane.f32.xlu0 %v2578_v40 }
 0xc41   : > { %v2580_v41 = vpop.xlane.xlu0 %2579 }
 0xc42   : > { %v2581_v42 = vmul.f32 0.03125, %v2580_v41 }
 0xc44   : > { %v5182_v44 = vsub.f32 %v2575_v39, %v2581_v42 }
 0xc46   : > { %v2583_v46 = vmul.f32 %v5182_v44, %v5182_v44 }
 0xc48   : > { %v2584_v48 = vsel %vm799_vm4, %v2583_v46, 0.0 }
 0xc49   : > { %2585 = vadd.xlane.f32.xlu1 %v2584_v48  ;;  %v5372_v48 = vld [vmem:[%s5560_s20] ss:$0 sm:$0xff] }
 0xcd2   : > { %v2586_v0 = vpop.xlane.xlu1 %2585 }
 0xcd3   : > { %v2587_v4 = vmul.f32 0.03125, %v2586_v0 }
 0xcd5   : > { %v2588_v7 = vadd.f32 1e-05, %v2587_v4  ;;  %v5377_v4 = vld [vmem:[%s5561_s21] ss:$0 sm:$0xff] }
 0xcd7   : > { %4547 = vrsqrt.f32 %v2588_v7 }
 0xce4   : > { %v4548_v8 = vpop.eup %4547 }
 0xce5   : > { %v2590_v15 = vmul.f32 %v4548_v8, %v5182_v44 }
 0xce7   : > { %v2597_v22 = vmul.f32 %v5316_v9, %v2590_v15 }
 0xce9   : > { %v2604_v26 = vadd.f32 %v5322_v16, %v2597_v22 }
 0xceb   : > { %4316 = vmatmul.mubr.msk.f32.vlgmr.msra.gmra.mxu1 %vm799_vm4, %v2604_v26 }
 0xcec   : > { %4354 = vmatpush3.msra.mxu1 %v4986_v43  ;;  %4361 = vmatprep.mubr.msk.f32.mxu1 %vm4635_vm1, %v4634_v2  ;;  %v5340_v43 = vld [vmem:[%s5558_s18 + $0x8] sm:$0xff] }
 0xced   : > { %4355 = vmatprep.subr.mxu1 %v4634_v2  ;;  %4347 = vmatpush3.msra.mxu0 %v5340_v43 }
 0xcee   : > { %4356 = vmatpush3.msra.mxu1 %v4993_v45  ;;  %4348 = vmatprep.subr.mxu0 %v4634_v2  ;;  %v5347_v45 = vld [vmem:[%s5558_s18] sm:$0xff] }
 0xcef   : > { %4357 = vmatprep.subr.mxu1 %v4634_v2  ;;  %4349 = vmatpush3.msra.mxu0 %v5347_v45 }
 0xcf0   : > { %4358 = vmatpush3.msra.mxu1 %v5003_v47  ;;  %4394 = vmatprep.subr.mxu0 %v4634_v2  ;;  %v5354_v47 = vld [vmem:[%s5557_s17] ss:$0 sm:$0xff] }
 0xcf1   : > { %4359 = vmatprep.subr.mxu1 %v4634_v2 }
 0xcf2   : > { %4360 = vmatpush3.msra.mxu1 %v5013_v49 }
 0xcf3   : > { %4364 = vmatprep.subr.mxu1 %v4634_v2 }
 0xdab   : > { %v2685_v49 = vpop.f32.mrf.mxu1 }
 0xdac   : > { %v2686_v27 = vadd.f32 %v5354_v47, %v2685_v49 }
 0xdad   : > { %v4317_v28 = vpop.f32.mrf.mxu1 }
 0xdae   : > { %v2689_v29 = vmax.f32 %v2686_v27, 0.0 }
 0xdb0   : > { %4351 = vmatmul.mubr.f32.vlgmr.msra.gmra.mxu0 %v2689_v29 }
 0xdb1   : > { %4395 = vmatpush3.msra.mxu0 %v5127_v5  ;;  %4396 = vmatprep.mubr.msk.f32.mxu0 %vm4635_vm1, %v4634_v2 }
 0xdb2   : > { %4404 = vmatprep.subr.mxu0 %v4634_v2 }
 0xe70   : > { %v2779_v31 = vpop.f32.mrf.mxu0 }
 0xe71   : > { %v2780_v32 = vadd.f32 %v5364_v30, %v2779_v31 }
 0xe72   : > { %v4352_v33 = vpop.f32.mrf.mxu0 }
 0xe73   : > { %v2783_v34 = vadd.f32 %v2780_v32, %v2604_v26 }
 0xe75   : > { %v2786_v36 = vsel %vm799_vm4, %v2783_v34, 0.0 }
 0xe76   : > { %2787 = vadd.xlane.f32.xlu0 %v2786_v36 }
 0xeff   : > { %v2788_v37 = vpop.xlane.xlu0 %2787 }
 0xf00   : > { %v2789_v5 = vmul.f32 0.03125, %v2788_v37 }
 0xf02   : > { %v2790_v38 = vsub.f32 %v2783_v34, %v2789_v5 }
 0xf04   : > { %v2791_v39 = vmul.f32 %v2790_v38, %v2790_v38 }
 0xf06   : > { %v2792_v40 = vsel %vm799_vm4, %v2791_v39, 0.0 }
 0xf07   : > { %2793 = vadd.xlane.f32.xlu0 %v2792_v40 }
 0xf90   : > { %v2794_v41 = vpop.xlane.xlu0 %2793 }
 0xf91   : > { %v2795_v42 = vmul.f32 0.03125, %v2794_v41 }
 0xf93   : > { %v2796_v44 = vadd.f32 1e-05, %v2795_v42 }
 0xf95   : > { %4549 = vrsqrt.f32 %v2796_v44 }
 0xfa2   : > { %v4550_v46 = vpop.eup %4549 }
 0xfa3   : > { %v2798_v0 = vmul.f32 %v4550_v46, %v2790_v38 }
 0xfa5   : > { %v2805_v7 = vmul.f32 %v5372_v48, %v2798_v0 }
 0xfa7   : > { %v2812_v8 = vadd.f32 %v5377_v4, %v2805_v7 }
 0xfa9   : > { %4362 = vmatmul.mubr.msk.f32.vlgmr.msra.gmra.mxu1 %vm799_vm4, %v2812_v8 }
 0xfaa   : > { %4365 = vmatpush3.xpose.msk.msra.mxu1 %vm882_vm5, %v5051_v1  ;;  %4366 = vmatprep.mubr.msk.f32.mxu1 %vm4635_vm1, %v4634_v2 }
 0xfab   : > { %4369 = vmatprep.subr.mxu1 %v4634_v2 }
0x1069   : > { %v2886_v15 = vpop.f32.mrf.mxu1 }
0x106a   : > { %2893 = vrot.lane.b32.xlu0 %v2886_v15, %s5610_s27  ;;  %2891 = vrot.lane.b32.xlu1 %v2886_v15, %s5612_s25  ;;  %s685_s27 = sand.u32 1, %s4623_s28   ;;  %s4017_s25 = sshll.u32 %s4782_s4, 7 }
0x106b   : > { %4367 = vmatmul.mubr.msk.f32.vlgmr.msra.gmra.mxu1 %vm882_vm5, %v2886_v15  ;;  %v4363_v22 = vpop.f32.mrf.mxu1  ;;  %s3871_s8 = scalar_lea.hbm %s5562_s22, %s4017_s25  ;;  %s3860_s1 = scalar_lea.sflag [#allocation3], %s685_s27 }
0x106c   : > { %4370 = vmatpush3.xpose.msk.msra.mxu1 %vm882_vm5, %v5061_v6  ;;  %4371 = vmatprep.mubr.msk.f32.mxu1 %vm4635_vm1, %v4634_v2  ;;  %s4645_s4 = smov [#allocation2]  }
0x106d   : > { %4374 = vmatprep.subr.mxu1 %v4634_v2  ;;  %s4575_s5 = sshll.u32 %s4645_s4, 4  ;;  %s4576_s5 = int_to_ptr.vmem [resolvable:$false] %s4575_s5 }
0x106e   : > { %2895 = vrot.lane.b32.xlu1 %v2886_v15, %s5609_s24  ;;  %s3948_s24 = sshll.u32 %s685_s27, 3  ;;  %s4577_s23 = scalar_lea.vmem %s4576_s5, 256 }
0x10dc   : > { %v2892_v1 = vpop.permute.xlu1 %2891  ;;  %v2894_v26 = vpop.permute.xlu0 %2893 }
0x10dd   : > { %4372 = vmatmul.mubr.msk.f32.vlgmr.msra.gmra.mxu1 %vm882_vm5, %v2892_v1 }
0x10de   : > { %4375 = vmatpush3.xpose.msk.msra.mxu1 %vm882_vm5, %v5053_v3  ;;  %4376 = vmatprep.mubr.msk.f32.mxu1 %vm4635_vm1, %v4634_v2 }
0x10df   : > { %4379 = vmatprep.subr.mxu1 %v4634_v2 }
0x10e0   : > { %v2896_v6 = vpop.permute.xlu1 %2895 }
0x10e1   : > { %4377 = vmatmul.mubr.msk.f32.vlgmr.msra.gmra.mxu1 %vm882_vm5, %v2894_v26 }
0x10e2   : > { %4380 = vmatpush3.xpose.msk.msra.mxu1 %vm882_vm5, %v5079_v13  ;;  %4381 = vmatprep.mubr.msk.f32.mxu1 %vm4635_vm1, %v4634_v2 }
0x10e3   : > { %4384 = vmatprep.subr.mxu1 %v4634_v2 }
0x10e5   : > { %4382 = vmatmul.mubr.msk.f32.vlgmr.msra.gmra.mxu1 %vm882_vm5, %v2896_v6 }
0x10e6   : > { %4385 = vmatpush3.msra.mxu1 %v5095_v17  ;;  %4386 = vmatprep.mubr.msk.f32.mxu1 %vm4635_vm1, %v4634_v2 }
0x10e7   : > { %4389 = vmatprep.subr.mxu1 %v4634_v2 }
0x112b   : > { %v2965_v3 = vpop.f32.mrf.mxu1 }
0x112c   : > { %v3185_v49 = vsel %vm882_vm5, %v2965_v3, -inf }
0x112d   : > { %3186 = vmax.xlane.f32.xlu1 %v3185_v49  ;;  %v4368_v13 = vpop.f32.mrf.mxu1 }
0x119d   : > { %v3037_v27 = vpop.f32.mrf.mxu1 }
0x119e   : > { %v3188_v28 = vsel %vm882_vm5, %v3037_v27, -inf }
0x119f   : > { %3189 = vmax.xlane.f32.xlu0 %v3188_v28  ;;  %v4373_v29 = vpop.f32.mrf.mxu1 }
0x11a1   : > { %v3109_v31 = vpop.f32.mrf.mxu1 }
0x11a2   : > { %v3191_v32 = vsel %vm882_vm5, %v3109_v31, -inf }
0x11a3   : > { %3192 = vmax.xlane.f32.xlu0 %v3191_v32  ;;  %v4378_v17 = vpop.f32.mrf.mxu1 }
0x11a5   : > { %v3181_v33 = vpop.f32.mrf.mxu1 }
0x11a6   : > { %v3194_v34 = vsel %vm882_vm5, %v3181_v33, -inf }
0x11a7   : > { %3195 = vmax.xlane.f32.xlu1 %v3194_v34  ;;  %v4383_v36 = vpop.f32.mrf.mxu1 }
0x11b6   : > { %v3187_v37 = vpop.xlane.xlu1 %3186 }
0x11b7   : > { %v3197_v5 = vsub.f32 %v2965_v3, %v3187_v37 }
0x11b9   : > { %v3201_v38 = vmul.f32 1.442695, %v3197_v5 }
0x11bb   : > { %4551 = vpow2.f32 %v3201_v38 }
0x11c8   : > { %v4552_v39 = vpop.eup %4551 }
0x11c9   : > { %v3209_v40 = vsel %vm882_vm5, %v4552_v39, 0.0 }
0x11ca   : > { %3210 = vadd.xlane.f32.xlu0 %v3209_v40 }
0x1228   : > { %v3190_v41 = vpop.xlane.xlu0 %3189 }
0x1229   : > { %v3198_v42 = vsub.f32 %v3037_v27, %v3190_v41 }
0x122b   : > { %v3203_v44 = vmul.f32 1.442695, %v3198_v42 }
0x122c   : > { %v3193_v46 = vpop.xlane.xlu0 %3192 }
0x122d   : > { %4553 = vpow2.f32 %v3203_v44  ;;  %v3199_v0 = vsub.f32 %v3109_v31, %v3193_v46 }
0x122f   : > { %v3205_v7 = vmul.f32 1.442695, %v3199_v0 }
0x1230   : > { %v3196_v8 = vpop.xlane.xlu1 %3195 }
0x1231   : > { %4555 = vpow2.f32 %v3205_v7  ;;  %v3200_v15 = vsub.f32 %v3181_v33, %v3196_v8 }
0x1233   : > { %v3207_v22 = vmul.f32 1.442695, %v3200_v15 }
0x1235   : > { %4557 = vpow2.f32 %v3207_v22 }
0x123a   : > { %v4554_v1 = vpop.eup %4553 }
0x123b   : > { %v3212_v26 = vsel %vm882_vm5, %v4554_v1, 0.0 }
0x123c   : > { %3213 = vadd.xlane.f32.xlu1 %v3212_v26 }
0x123e   : > { %v4556_v6 = vpop.eup %4555 }
0x123f   : > { %v3215_v3 = vsel %vm882_vm5, %v4556_v6, 0.0 }
0x1240   : > { %3216 = vadd.xlane.f32.xlu0 %v3215_v3 }
0x1242   : > { %v4558_v49 = vpop.eup %4557 }
0x1243   : > { %v3218_v13 = vsel %vm882_vm5, %v4558_v49, 0.0 }
0x1244   : > { %3219 = vadd.xlane.f32.xlu1 %v3218_v13 }
0x1253   : > { %v3211_v27 = vpop.xlane.xlu0 %3210 }
0x1254   : > { %4559 = vrcp.f32 %v3211_v27 }
0x1261   : > { %v4560_v28 = vpop.eup %4559 }
0x1262   : > { %v3225_v29 = vmul.f32 %v4560_v28, %v4552_v39 }
0x1264   : > { %4387 = vmatmul.mubr.msk.f32.vlgmr.msra.gmra.mxu1 %vm882_vm5, %v3225_v29 }
0x1265   : > { %4390 = vmatpush3.msra.mxu1 %v5113_v60  ;;  %4391 = vmatprep.mubr.msk.f32.mxu1 %vm4635_vm1, %v4634_v2 }
0x1266   : > { %4399 = vmatprep.subr.mxu1 %v4634_v2 }
0x12c5   : > { %v3214_v31 = vpop.xlane.xlu1 %3213 }
0x12c6   : > { %4561 = vrcp.f32 %v3214_v31 }
0x12c9   : > { %v3217_v32 = vpop.xlane.xlu0 %3216 }
0x12ca   : > { %4563 = vrcp.f32 %v3217_v32 }
0x12cd   : > { %v3220_v17 = vpop.xlane.xlu1 %3219 }
0x12ce   : > { %4565 = vrcp.f32 %v3220_v17 }
0x12d3   : > { %v4562_v33 = vpop.eup %4561 }
0x12d4   : > { %v3226_v34 = vmul.f32 %v4562_v33, %v4554_v1 }
0x12d6   : > { %4392 = vmatmul.mubr.msk.f32.vlgmr.msra.gmra.mxu1 %vm882_vm5, %v3226_v34 }
0x12d7   : > { %v4564_v36 = vpop.eup %4563  ;;  %4400 = vmatpush3.msra.mxu1 %v5120_v21  ;;  %4401 = vmatprep.mubr.msk.f32.mxu1 %vm4635_vm1, %v4634_v2 }
0x12d8   : > { %v3227_v60 = vmul.f32 %v4564_v36, %v4556_v6  ;;  %4415 = vmatprep.subr.mxu1 %v4634_v2 }
0x12da   : > { %4397 = vmatmul.mubr.msk.f32.vlgmr.msra.gmra.mxu0 %vm882_vm5, %v3227_v60 }
0x12db   : > { %v4566_v37 = vpop.eup %4565  ;;  %4405 = vmatpush3.msra.mxu0 %v5141_v10  ;;  %4412 = vmatprep.mubr.msk.f32.mxu0 %vm4635_vm1, %v4634_v2 }
0x12dc   : > { %v3228_v5 = vmul.f32 %v4566_v37, %v4558_v49  ;;  %4406 = vmatprep.subr.mxu0 %v4634_v2 }
0x12dd   : > { %4407 = vmatpush3.msra.mxu0 %v5146_v12 }
0x12de   : > { %4402 = vmatmul.mubr.msk.f32.vlgmr.msra.gmra.mxu1 %vm882_vm5, %v3228_v5  ;;  %4408 = vmatprep.subr.mxu0 %v4634_v2 }
0x12df   : > { %4409 = vmatpush3.msra.mxu0 %v5153_v14  ;;  %4416 = vmatpush3.msra.mxu1 %v5190_v19 }
0x12e0   : > { %4410 = vmatprep.subr.mxu0 %v4634_v2  ;;  %4417 = vmatprep.subr.mxu1 %v4634_v2 }
0x12e1   : > { %4411 = vmatpush3.msra.mxu0 %v5163_v20  ;;  %4418 = vmatpush3.msra.mxu1 %v5196_v50 }
0x12e2   : > { %4419 = vmatprep.subr.mxu1 %v4634_v2  ;;  %4423 = vmatprep.mubr.msk.f32.mxu1 %vm4635_vm1, %v4634_v2 }
0x12e3   : > { %4420 = vmatpush3.msra.mxu1 %v5202_v51  ;;  %4426 = vmatprep.subr.mxu0 %v4634_v2 }
0x12e4   : > { %4421 = vmatprep.subr.mxu1 %v4634_v2 }
0x12e5   : > { %4422 = vmatpush3.msra.mxu1 %v5209_v52 }
0x1324   : > { %v3298_v21 = vpop.f32.mrf.mxu1 }
0x1326   : > { %v4388_v10 = vpop.f32.mrf.mxu1 }
0x1396   : > { %v3371_v12 = vpop.f32.mrf.mxu1 }
0x1397   : > { %3522 = vrot.lane.b32.xlu0 %v3371_v12, %s5613_s2  ;;  %s687_s2 = scalar_lea.vmem [#allocation2], %s3948_s24 }
0x1398   : > { %v4393_v14 = vpop.f32.mrf.mxu1 }
0x139a   : > { %v3444_v20 = vpop.f32.mrf.mxu0 }
0x139b   : > { %3526 = vrot.lane.b32.xlu1 %v3444_v20, %s5615_s29 }
0x139c   : > { %v4398_v19 = vpop.f32.mrf.mxu0 }
0x139e   : > { %v3517_v50 = vpop.f32.mrf.mxu1 }
0x139f   : > { %3530 = vrot.lane.b32.xlu1 %v3517_v50, %s5614_s3  ;;  %s3873_s3 = sshll.u32 %s687_s2, 4  ;;  %s3874_s3 = int_to_ptr.vmem [resolvable:$true] %s3873_s3 }
0x13a0   : > { %v4403_v51 = vpop.f32.mrf.mxu1  ;;  %s4571_s0 = scalar_lea.vmem %s3874_s3, 128  ;;  %p4578_p0 = scmp.lt.s32.totalorder %s3874_s3, %s4576_s5 }
0x13a1   : > { %p4572_p11 = scmp.ne.s32.totalorder %s3874_s3, %s4571_s0  ;;  %p4579_p1 = scmp.lt.s32.totalorder %s4577_s23, %s4571_s0 }
0x13a3   : > { %p4573_p12 = pnand %p4572_p11, %p4799_p5  ;;  %p4580_p2 = por %p4579_p1, %p4578_p0 }
0x13a5   : > { %p4574_p13 = pneg %p4573_p12 }
0x13a7   : > { %p4581_p3 = pnand %p4580_p2, %p4574_p13 }
0x1409   : > { %v3523_v38 = vpop.permute.xlu0 %3522 }
0x140a   : > { %v3533_v40 = vsel %vm882_vm5, %v3298_v21, %v3523_v38 }
0x140d   : > { %v3527_v39 = vpop.permute.xlu1 %3526 }
0x140e   : > { %v3534_v52 = vsel %vm1546_vm6, %v3533_v40, %v3527_v39 }
0x1411   : > { %v3531_v41 = vpop.permute.xlu1 %3530 }
0x1412   : > { %v3535_v42 = vsel %vm1548_vm7, %v3534_v52, %v3531_v41 }
0x1413   : > { %4413 = vmatmul.mubr.msk.f32.vlgmr.msra.gmra.mxu0 %vm799_vm4, %v3535_v42 }
0x1414   : > { %4427 = vmatpush3.msra.mxu0 %v5217_v53  ;;  %4458 = vmatprep.mubr.msk.f32.mxu0 %vm4635_vm1, %v4634_v2 }
0x1415   : > { %4428 = vmatprep.subr.mxu0 %v4634_v2 }
0x1416   : > { %4429 = vmatpush3.msra.mxu0 %v5222_v54 }
0x1417   : > { %4430 = vmatprep.subr.mxu0 %v4634_v2 }
0x1418   : > { %4431 = vmatpush3.msra.mxu0 %v5230_v55 }
0x1419   : > { %4432 = vmatprep.subr.mxu0 %v4634_v2 }
0x141a   : > { %4433 = vmatpush3.msra.mxu0 %v5237_v56 }
0x141b   : > { %4434 = vmatprep.subr.mxu0 %v4634_v2 }
0x141c   : > { %4435 = vmatpush3.msra.mxu0 %v5244_v57 }
0x141d   : > { %4436 = vmatprep.subr.mxu0 %v4634_v2 }
0x141e   : > { %4437 = vmatpush3.msra.mxu0 %v5251_v58 }
0x141f   : > { %4438 = vmatprep.subr.mxu0 %v4634_v2 }
0x1420   : > { %4439 = vmatpush3.msra.mxu0 %v5258_v59 }
0x1421   : > { %4440 = vmatprep.subr.mxu0 %v4634_v2 }
0x1422   : > { %4441 = vmatpush3.msra.mxu0 %v5265_v61 }
0x1423   : > { %4442 = vmatprep.subr.mxu0 %v4634_v2 }
0x1424   : > { %4443 = vmatpush3.msra.mxu0 %v5272_v18 }
0x1425   : > { %4444 = vmatprep.subr.mxu0 %v4634_v2 }
0x1426   : > { %4445 = vmatpush3.msra.mxu0 %v5279_v24 }
0x1427   : > { %4446 = vmatprep.subr.mxu0 %v4634_v2 }
0x1428   : > { %4447 = vmatpush3.msra.mxu0 %v5286_v25 }
0x1429   : > { %4448 = vmatprep.subr.mxu0 %v4634_v2 }
0x142a   : > { %4449 = vmatpush3.msra.mxu0 %v5293_v62 }
0x142b   : > { %4450 = vmatprep.subr.mxu0 %v4634_v2 }
0x142c   : > { %4451 = vmatpush3.msra.mxu0 %v5300_v23 }
0x142d   : > { %4452 = vmatprep.subr.mxu0 %v4634_v2 }
0x142e   : > { %4453 = vmatpush3.msra.mxu0 %v5307_v63 }
0x142f   : > { %4454 = vmatprep.subr.mxu0 %v4634_v2 }
0x1430   : > { %4455 = vmatpush3.msra.mxu0 %v5340_v43 }
0x1431   : > { %4456 = vmatprep.subr.mxu0 %v4634_v2 }
0x1432   : > { %4457 = vmatpush3.msra.mxu0 %v5347_v45 }
0x14d3   : > { %v3616_v53 = vpop.f32.mrf.mxu0 }
0x14d4   : > { %v3617_v54 = vadd.f32 %v5177_v35, %v3616_v53 }
0x14d5   : > { %v4414_v55 = vpop.f32.mrf.mxu0 }
0x14d6   : > { %v3620_v56 = vadd.f32 %v3617_v54, %v5069_v11 }
0x14d8   : > { %v3623_v57 = vsel %vm799_vm4, %v3620_v56, 0.0 }
0x14d9   : > { %3624 = vadd.xlane.f32.xlu0 %v3623_v57 }
0x1562   : > { %v3625_v58 = vpop.xlane.xlu0 %3624 }
0x1563   : > { %v3626_v59 = vmul.f32 0.03125, %v3625_v58 }
0x1565   : > { %v3627_v61 = vsub.f32 %v3620_v56, %v3626_v59 }
0x1567   : > { %v3628_v18 = vmul.f32 %v3627_v61, %v3627_v61 }
0x1569   : > { %v3629_v24 = vsel %vm799_vm4, %v3628_v18, 0.0 }
0x156a   : > { %3630 = vadd.xlane.f32.xlu1 %v3629_v24 }
0x15f3   : > { %v3631_v25 = vpop.xlane.xlu1 %3630 }
0x15f4   : > { %v3632_v2 = vmul.f32 0.03125, %v3631_v25 }
0x15f6   : > { %v3633_v62 = vadd.f32 1e-05, %v3632_v2 }
0x15f8   : > { %4567 = vrsqrt.f32 %v3633_v62 }
0x1605   : > { %v4568_v23 = vpop.eup %4567 }
0x1606   : > { %v3635_v63 = vmul.f32 %v4568_v23, %v3627_v61 }
0x1608   : > { %v3642_v35 = vmul.f32 %v5316_v9, %v3635_v63 }
0x160a   : > { %v3649_v11 = vadd.f32 %v5322_v16, %v3642_v35 }
0x160c   : > { %4424 = vmatmul.mubr.msk.f32.vlgmr.msra.gmra.mxu1 %vm799_vm4, %v3649_v11 }
0x16cc   : > { %v3730_v43 = vpop.f32.mrf.mxu1 }
0x16cd   : > { %v3731_v45 = vadd.f32 %v5354_v47, %v3730_v43 }
0x16ce   : > { %v4425_v44 = vpop.f32.mrf.mxu1 }
0x16cf   : > { %v3734_v46 = vmax.f32 %v3731_v45, 0.0 }
0x16d1   : > { %4459 = vmatmul.mubr.f32.vlgmr.msra.gmra.mxu0 %v3734_v46 }
0x1791   : > { %v3824_v0 = vpop.f32.mrf.mxu0 }
0x1792   : > { %v3825_v7 = vadd.f32 %v5364_v30, %v3824_v0 }
0x1793   : > { %v4460_v8 = vpop.f32.mrf.mxu0 }
0x1794   : > { %v3828_v15 = vadd.f32 %v3825_v7, %v3649_v11 }
0x1796   : > { %v3831_v22 = vsel %vm799_vm4, %v3828_v15, 0.0 }
0x1797   : > { %3832 = vadd.xlane.f32.xlu0 %v3831_v22 }
0x1820   : > { %v3833_v9 = vpop.xlane.xlu0 %3832 }
0x1821   : > { %v3834_v16 = vmul.f32 0.03125, %v3833_v9 }
0x1823   : > { %v3835_v1 = vsub.f32 %v3828_v15, %v3834_v16 }
0x1825   : > { %v3836_v26 = vmul.f32 %v3835_v1, %v3835_v1 }
0x1827   : > { %v3837_v6 = vsel %vm799_vm4, %v3836_v26, 0.0 }
0x1828   : > { %3838 = vadd.xlane.f32.xlu0 %v3837_v6 }
0x18b1   : > { %v3839_v47 = vpop.xlane.xlu0 %3838 }
0x18b2   : > { %v3840_v3 = vmul.f32 0.03125, %v3839_v47 }
0x18b4   : > { %v3841_v49 = vadd.f32 1e-05, %v3840_v3 }
0x18b6   : > { %4569 = vrsqrt.f32 %v3841_v49 }
0x18c3   : > { %v4570_v30 = vpop.eup %4569 }
0x18c4   : > { %v3843_v13 = vmul.f32 %v4570_v30, %v3835_v1 }
0x18c6   : > { %v3850_v27 = vmul.f32 %v5372_v48, %v3843_v13 }
0x18c8   : > { %v3857_v28 = vadd.f32 %v5377_v4, %v3850_v27 }
0x18ca   : > { %3858 = vst.msk [vmem:[%s687_s2] sm:$0xff] %vm799_vm4, %v3857_v28 }
0x18cb   : > { %4584 = shalt.err (!%p4581_p3)
}
0x18cc   : > { %s4585_s24 = scalar_lea.hbm %s3871_s8, 128  ;;  %s4589_s2 = scalar_lea.hbm %s5562_s22, 256 }
0x18cd   : > { %p4586_p4 = scmp.ne.s32.totalorder %s3871_s8, %s4585_s24  ;;  %p4590_p9 = scmp.lt.s32.totalorder %s3871_s8, %s5562_s22 }
0x18ce   : > { %p4591_p10 = scmp.lt.s32.totalorder %s4589_s2, %s4585_s24 }
0x18cf   : > { %p4587_p7 = pnand %p4586_p4, %p4799_p5 }
0x18d0   : > { %p4592_p11 = por %p4591_p10, %p4590_p9 }
0x18d1   : > { %p4588_p8 = pneg %p4587_p7 }
0x18d3   : > { %p4593_p12 = pnand %p4592_p11, %p4588_p8 }
0x18d5   : > { %4596 = shalt.err (!%p4593_p12)
}
0x18d6   : > { %4461 = dma.vmem_to_hbm [thread:$0]  (%p4799_p5), %s3874_s3, 128, %s3871_s8, %s3860_s1  }
0x18d7 PF: > { %s5616_s0 = sld [smem:[#allocation5_spill]]  ;;  %p4467_p13 = scmp.ge.s32.totalorder %s4631_s30, 2 }
0x18d9   : > { %p4464_p0 = pnand %p4467_p13, %p4803_p6 }
0x18db   : > { %p4465_p1 = pneg %p4464_p0 }
0x18dd   : > { %s3885_s5 = sand.u32 1, %s5616_s0  }
0x18de   : > { %s3886_s23 = scalar_lea.sflag [#allocation3], %s3885_s5 }
0x18df   : > { %4614 = dma.done.wait (%p4465_p1), %s3886_s23, 128  }
0x18e0   : > { %4616 = vsyncadd (%p4465_p1), %s3886_s23, 4294967168  ;;  %s5618_s30 = sld [smem:[#allocation7_spill]]  ;;  %s5621_s3 = smov %s4623_s28 }
0x18e1   : > { %s5619_s24 = sld [smem:[#allocation6_spill]] }
0x18e2   : > { %s5620_s29 = sld [smem:[#allocation8_spill]] }
0x18e6   : > { %p32_p2 = scmp.ge.s32.totalorder %s5618_s30, 4  }
0x18e7   : > { %s5622_s28 = smov %s5619_s24 }
0x18e8   :  { %34 = sbr.rel (!%p32_p2) target bundleno = 13 (0xd), region = 146 }
0x18ed   :  { %3891 = vsyncpa [#allocation3], 1 }
0x18ee   :  { %3893 = vsyncpa [#allocation3 + $0x1], 1 }

</bundles_post_ra>
